<compile_context>
chip_gen: v6e
topology: v6e:2x2x1
jax: 0.10.0
libtpu: 0.0.40
codegen_flags: <defaults>
</compile_context>

<pallas_src>
import functools

import jax
import jax.numpy as jnp
from jax.experimental import pallas as pl
from jax.experimental.pallas import tpu as pltpu

_CHARB_EPS2 = 0.001 ** 2  # 1e-6

# Fixed filters of the module (used by the pure-JAX reference only; the kernel uses the
# separable decomposition of the same filters).
_SOBEL_X = ((-1.0, 0.0, 1.0), (-2.0, 0.0, 2.0), (-1.0, 0.0, 1.0))
_SOBEL_Y = ((-1.0, -2.0, -1.0), (0.0, 0.0, 0.0), (1.0, 2.0, 1.0))
_LAPLACE = ((-1.0, -1.0, -1.0), (-1.0, 8.0, -1.0), (-1.0, -1.0, -1.0))


def _shift_rows(x, s):
    """y[..., i, :] = x[..., i+s, :] with out-of-range rows -> 0 (s in {-1, +1})."""
    z = jnp.zeros(x.shape[:-2] + (1, x.shape[-1]), x.dtype)
    if s == 1:
        return jnp.concatenate([x[..., 1:, :], z], axis=-2)
    return jnp.concatenate([z, x[..., :-1, :]], axis=-2)


def _shift_cols(x, s):
    """y[..., j] = x[..., j+s] with out-of-range cols -> 0 (s in {-1, +1})."""
    z = jnp.zeros(x.shape[:-1] + (1,), x.dtype)
    if s == 1:
        return jnp.concatenate([x[..., 1:], z], axis=-1)
    return jnp.concatenate([z, x[..., :-1]], axis=-1)


def _edges(x):
    """Sobel-x, Sobel-y, Laplacian 3x3 'same' (zero-padded) cross-correlations of x.

    Separable forms sharing the shifted copies:
      sobel_x = [1,2,1]^T (rows) (x) [-1,0,1] (cols)
      sobel_y = [-1,0,1]^T (rows) (x) [ 1,2,1] (cols)
      laplace = 9*delta - ones(3,3), box = [1,1,1]^T (x) [1,1,1]
    Zero-filled shifts compose exactly like a zero-padded 2D conv.
    """
    xl = _shift_cols(x, -1)          # x[..., j-1]
    xr = _shift_cols(x, +1)          # x[..., j+1]
    csum = xl + x + xr               # horizontal [1,1,1]
    h121 = csum + x                  # horizontal [1,2,1]
    hdiff = xr - xl                  # horizontal [-1,0,1]

    gx = _shift_rows(hdiff, -1) + 2.0 * hdiff + _shift_rows(hdiff, +1)
    gy = _shift_rows(h121, +1) - _shift_rows(h121, -1)
    box = _shift_rows(csum, -1) + csum + _shift_rows(csum, +1)
    lap = 9.0 * x - box
    return gx, gy, lap


def _sum_all(x3d):
    """Sum a (TK, H, W) array to a scalar (leading-axis adds, then 2D lane/sublane reduce)."""
    return jnp.sum(jnp.sum(x3d, axis=0))


def _smoothness_kernel(pred_ref, tgt_ref, out_ref, w2_ref, *, alpha):
    """One (batch, K-tile) step.

    pred_ref: (1, TK, H, W)  TK saliency channels of one image
    tgt_ref : (1, H, W)      gray target (same block for every K-tile of this image)
    out_ref : (1, 1, 1)      per-batch loss; resident across the K axis (accumulator)
    w2_ref  : (3, H, W)      cached SQUARED target weights [w_x^2, w_y^2, w_lap^2]
    """
    k = pl.program_id(1)
    H, W = pred_ref.shape[-2], pred_ref.shape[-1]
    inv_hw = 1.0 / float(H * W)

    @pl.when(k == 0)
    def _init():
        # Target-derived weights: computed ONCE per batch element (EUP exp only here).
        g = tgt_ref[0].astype(jnp.float32)               # (H, W)
        gt_x, gt_y, lap_g = _edges(g)
        m2a = jnp.float32(-2.0 * alpha)
        # (|p| * w)^2 == p^2 * w^2 with w^2 = exp(-2*alpha*|gt_edge|).
        w2_ref[0] = jnp.exp(jnp.abs(gt_x) * m2a)
        w2_ref[1] = jnp.exp(jnp.abs(gt_y) * m2a)
        w2_ref[2] = jnp.exp(jnp.abs(lap_g) * m2a)
        out_ref[...] = jnp.zeros_like(out_ref)

    p = pred_ref[0].astype(jnp.float32)                  # (TK, H, W)

    # Shared shifted copies for the separable filters.
    xl = _shift_cols(p, -1)
    xr = _shift_cols(p, +1)
    hdiff = xr - xl                                      # cols [-1, 0, 1]
    csum = xl + p + xr                                   # cols [ 1, 1, 1]

    # Filter 1: Sobel-x = [1,2,1]^T (rows) (x) [-1,0,1] (cols)
    gx = _shift_rows(hdiff, -1) + 2.0 * hdiff + _shift_rows(hdiff, +1)
    s = 10.0 * _sum_all(jnp.sqrt(gx * gx * w2_ref[0] + _CHARB_EPS2))

    # Filter 2: Sobel-y = [-1,0,1]^T (rows) (x) [1,2,1] (cols)
    h121 = csum + p
    gy = _shift_rows(h121, +1) - _shift_rows(h121, -1)
    s = s + 10.0 * _sum_all(jnp.sqrt(gy * gy * w2_ref[1] + _CHARB_EPS2))

    # Filter 3: Laplacian = 9*delta - box, box = [1,1,1]^T (x) [1,1,1]
    box = _shift_rows(csum, -1) + csum + _shift_rows(csum, +1)
    lap = 9.0 * p - box
    s = s + _sum_all(jnp.sqrt(lap * lap * w2_ref[2] + _CHARB_EPS2))

    # sum over channels of per-channel means == sum over (TK, H, W) / (H * W)
    out_ref[...] += jnp.full(out_ref.shape, s * inv_hw, out_ref.dtype)


def _vmem_budget_bytes():
    """Per-generation scoped-VMEM budget: ~75% of physical, capped at 100 MiB."""
    cap = 64 * 1024 * 1024  # conservative fallback (v7x physical)
    try:
        info = pltpu.get_tpu_info()
        cap = int(getattr(info, "vmem_capacity_bytes", cap))
    except Exception:
        pass
    return int(min(0.75 * cap, 100 * 1024 * 1024))


def _pick_tk(K, H, W, pred_itemsize, budget_bytes):
    """Largest divisor of K whose per-step VMEM footprint fits the budget."""
    hw = H * W
    fixed = (2 * hw * 4          # target block, double-buffered (<= 4B elems)
             + 3 * hw * 4        # cached squared-weight scratch
             + (2 << 20))        # output block, semaphores, compiler-internal slack
    per_chan = 2 * hw * pred_itemsize + 9 * hw * 4  # dbuf pred block + live f32 temps
    for tk in range(K, 0, -1):
        if K % tk == 0 and fixed + tk * per_chan <= budget_bytes:
            return tk
    return 1  # TODO(synk): tile H with a 1-row halo if even a single channel won't fit.


def smoothness_loss(pred, target, label=None, weight=None, alpha=10.0,
                    with_scribble=False):
    """Pallas implementation of SmoothnessLoss.forward.

    pred:   [B, K, H, W] (f32 or bf16)
    target: [B, H, W]    gray image
    label:  unused (only needed by with_scribble=True)
    weight: optional [B]
    """
    del label
    if with_scribble:
        # TODO(synk): with_scribble=True path (w_x/w_y/w_lap[label] = 1) not implemented.
        raise NotImplementedError("with_scribble=True is not supported")

    B, K, H, W = pred.shape

    budget = _vmem_budget_bytes()
    tk = _pick_tk(K, H, W, pred.dtype.itemsize, budget)
    n_k = K // tk

    # Advisory cost for XLA scheduling around the custom call.
    flops = 30 * B * K * H * W + 30 * B * H * W
    transcendentals = 3 * B * K * H * W + 3 * B * H * W     # sqrt + exp
    bytes_accessed = (pred.size * pred.dtype.itemsize
                      + target.size * target.dtype.itemsize + B * 4)

    per_b = pl.pallas_call(
        functools.partial(_smoothness_kernel, alpha=float(alpha)),
        out_shape=jax.ShapeDtypeStruct((B, 1, 1), jnp.float32),
        grid=(B, n_k),
        in_specs=[
            pl.BlockSpec((1, tk, H, W), lambda b, k: (b, k, 0, 0)),
            pl.BlockSpec((1, H, W), lambda b, k: (b, 0, 0)),
        ],
        out_specs=pl.BlockSpec((1, 1, 1), lambda b, k: (b, 0, 0)),
        scratch_shapes=[pltpu.VMEM((3, H, W), jnp.float32)],
        compiler_params=pltpu.CompilerParams(
            dimension_semantics=("parallel", "arbitrary"),
            vmem_limit_bytes=budget),
        cost_estimate=pl.CostEstimate(
            flops=flops,
            transcendentals=transcendentals,
            bytes_accessed=bytes_accessed),
    )(pred, target)

    loss_per_b = per_b[:, 0, 0]  # [B], already summed over the K saliency channels
    if weight is not None:
        return (loss_per_b * weight).sum() / (weight.sum() + 1e-8)
    return loss_per_b.mean()


def _smoothness_loss_ref(pred, target, alpha=10.0):
    """Pure-JAX reference (direct 3x3 taps, padded), independent of the separable trick."""
    B, K, H, W = pred.shape
    pred_p = jnp.pad(pred.astype(jnp.float32), ((0, 0), (0, 0), (1, 1), (1, 1)))
    tgt_p = jnp.pad(target.astype(jnp.float32), ((0, 0), (1, 1), (1, 1)))

    def conv(img_p, w):  # img_p: [..., H+2, W+2]
        acc = jnp.zeros(img_p.shape[:-2] + (H, W), jnp.float32)
        for di in range(3):
            for dj in range(3):
                c = w[di][dj]
                if c != 0.0:
                    acc = acc + c * img_p[..., di:di + H, dj:dj + W]
        return acc

    gt_x, gt_y = conv(tgt_p, _SOBEL_X), conv(tgt_p, _SOBEL_Y)
    w_x = jnp.exp(jnp.abs(gt_x) * (-alpha))
    w_y = jnp.exp(jnp.abs(gt_y) * (-alpha))
    w_lap = jnp.exp(jnp.abs(conv(tgt_p, _LAPLACE)) * (-alpha))

    loss = jnp.zeros((B,), jnp.float32)
    for o in range(K):
        pp = pred_p[:, o]
        sal_x, sal_y = jnp.abs(conv(pp, _SOBEL_X)), jnp.abs(conv(pp, _SOBEL_Y))
        cps_xy = (jnp.sqrt((sal_x * w_x) ** 2 + _CHARB_EPS2)
                  + jnp.sqrt((sal_y * w_y) ** 2 + _CHARB_EPS2))
        lap_sal = jnp.abs(conv(pp, _LAPLACE))
        wl = jnp.sqrt((lap_sal * w_lap) ** 2 + _CHARB_EPS2)
        loss = loss + 10.0 * cps_xy.mean(axis=(1, 2)) + wl.mean(axis=(1, 2))
    return loss.mean()


if __name__ == "__main__":
    B, K, H, W = 2, 4, 16, 16
    key = jax.random.PRNGKey(0)
    k1, k2 = jax.random.split(key)
    pred = jax.nn.sigmoid(jax.random.normal(k1, (B, K, H, W), jnp.float32))
    target = jax.nn.sigmoid(jax.random.normal(k2, (B, H, W), jnp.float32))
    label = jnp.zeros((B, H, W), jnp.float32)  # unused (with_scribble=False)

    out = smoothness_loss(pred, target, label=label, weight=None, alpha=10.0)
    out = jax.block_until_ready(out)

    ref = _smoothness_loss_ref(pred, target, alpha=10.0)
    assert jnp.allclose(out, ref, rtol=1e-4, atol=1e-4), (out, ref)
    print("KERNEL_OK")
</pallas_src>

<mosaic_0001>
module attributes {stable_mosaic.version = 11 : i64} {
  func.func @_smoothness_kernel(%arg0: i32, %arg1: i32, %arg2: memref<1x4x16x16xf32, #tpu.memory_space<vmem>>, %arg3: memref<1x16x16xf32, #tpu.memory_space<vmem>>, %arg4: memref<1x1x1xf32, #tpu.memory_space<vmem>>, %arg5: memref<3x16x16xf32, #tpu.memory_space<vmem>>) attributes {dimension_semantics = [#tpu.dimension_semantics<parallel>, #tpu.dimension_semantics<arbitrary>], iteration_bounds = array<i64: 2, 1>, scalar_prefetch = 0 : i64, scratch_operands = 1 : i64, tpu.core_type = #tpu.core_type<tc>, window_params = [{transform_indices = @transform_0, window_bounds = array<i64: 1, 4, 16, 16>}, {transform_indices = @transform_1, window_bounds = array<i64: 1, 16, 16>}, {transform_indices = @transform_2, window_bounds = array<i64: 1, 1, 1>}]} {
    %c0_i32 = arith.constant 0 : i32
    %0 = arith.cmpi eq, %arg1, %c0_i32 : i32
    %1 = arith.extui %0 : i1 to i32
    %c0_i32_0 = arith.constant 0 : i32
    %2 = arith.cmpi ne, %1, %c0_i32_0 : i32
    scf.if %2 {
      %c0_38 = arith.constant 0 : index
      %c0_39 = arith.constant 0 : index
      %c0_40 = arith.constant 0 : index
      %94 = vector.load %arg3[%c0_38, %c0_39, %c0_40] : memref<1x16x16xf32, #tpu.memory_space<vmem>>, vector<1x16x16xf32>
      %95 = vector.shape_cast %94 : vector<1x16x16xf32> to vector<16x16xf32>
      %cst_41 = arith.constant 0.000000e+00 : f32
      %96 = vector.broadcast %cst_41 : f32 to vector<16x1xf32>
      %97 = vector.extract_strided_slice %95 {offsets = [0, 0], sizes = [16, 15], strides = [1, 1]} : vector<16x16xf32> to vector<16x15xf32>
      %98 = tpu.concatenate %96, %97 in 1 : vector<16x1xf32>, vector<16x15xf32> -> vector<16x16xf32>
      %cst_42 = arith.constant 0.000000e+00 : f32
      %99 = vector.broadcast %cst_42 : f32 to vector<16x1xf32>
      %100 = vector.extract_strided_slice %95 {offsets = [0, 1], sizes = [16, 15], strides = [1, 1]} : vector<16x16xf32> to vector<16x15xf32>
      %101 = tpu.concatenate %100, %99 in 1 : vector<16x15xf32>, vector<16x1xf32> -> vector<16x16xf32>
      %102 = arith.addf %98, %95 : vector<16x16xf32>
      %103 = arith.addf %102, %101 : vector<16x16xf32>
      %104 = arith.addf %103, %95 : vector<16x16xf32>
      %105 = arith.subf %101, %98 : vector<16x16xf32>
      %cst_43 = arith.constant 0.000000e+00 : f32
      %106 = vector.broadcast %cst_43 : f32 to vector<1x16xf32>
      %107 = vector.extract_strided_slice %105 {offsets = [0, 0], sizes = [15, 16], strides = [1, 1]} : vector<16x16xf32> to vector<15x16xf32>
      %108 = tpu.concatenate %106, %107 in 0 : vector<1x16xf32>, vector<15x16xf32> -> vector<16x16xf32>
      %cst_44 = arith.constant 2.000000e+00 : f32
      %109 = vector.broadcast %cst_44 : f32 to vector<16x16xf32>
      %110 = arith.mulf %109, %105 : vector<16x16xf32>
      %111 = arith.addf %108, %110 : vector<16x16xf32>
      %cst_45 = arith.constant 0.000000e+00 : f32
      %112 = vector.broadcast %cst_45 : f32 to vector<1x16xf32>
      %113 = vector.extract_strided_slice %105 {offsets = [1, 0], sizes = [15, 16], strides = [1, 1]} : vector<16x16xf32> to vector<15x16xf32>
      %114 = tpu.concatenate %113, %112 in 0 : vector<15x16xf32>, vector<1x16xf32> -> vector<16x16xf32>
      %115 = arith.addf %111, %114 : vector<16x16xf32>
      %cst_46 = arith.constant 0.000000e+00 : f32
      %116 = vector.broadcast %cst_46 : f32 to vector<1x16xf32>
      %117 = vector.extract_strided_slice %104 {offsets = [1, 0], sizes = [15, 16], strides = [1, 1]} : vector<16x16xf32> to vector<15x16xf32>
      %118 = tpu.concatenate %117, %116 in 0 : vector<15x16xf32>, vector<1x16xf32> -> vector<16x16xf32>
      %cst_47 = arith.constant 0.000000e+00 : f32
      %119 = vector.broadcast %cst_47 : f32 to vector<1x16xf32>
      %120 = vector.extract_strided_slice %104 {offsets = [0, 0], sizes = [15, 16], strides = [1, 1]} : vector<16x16xf32> to vector<15x16xf32>
      %121 = tpu.concatenate %119, %120 in 0 : vector<1x16xf32>, vector<15x16xf32> -> vector<16x16xf32>
      %122 = arith.subf %118, %121 : vector<16x16xf32>
      %cst_48 = arith.constant 0.000000e+00 : f32
      %123 = vector.broadcast %cst_48 : f32 to vector<1x16xf32>
      %124 = vector.extract_strided_slice %103 {offsets = [0, 0], sizes = [15, 16], strides = [1, 1]} : vector<16x16xf32> to vector<15x16xf32>
      %125 = tpu.concatenate %123, %124 in 0 : vector<1x16xf32>, vector<15x16xf32> -> vector<16x16xf32>
      %126 = arith.addf %125, %103 : vector<16x16xf32>
      %cst_49 = arith.constant 0.000000e+00 : f32
      %127 = vector.broadcast %cst_49 : f32 to vector<1x16xf32>
      %128 = vector.extract_strided_slice %103 {offsets = [1, 0], sizes = [15, 16], strides = [1, 1]} : vector<16x16xf32> to vector<15x16xf32>
      %129 = tpu.concatenate %128, %127 in 0 : vector<15x16xf32>, vector<1x16xf32> -> vector<16x16xf32>
      %130 = arith.addf %126, %129 : vector<16x16xf32>
      %cst_50 = arith.constant 9.000000e+00 : f32
      %131 = vector.broadcast %cst_50 : f32 to vector<16x16xf32>
      %132 = arith.mulf %131, %95 : vector<16x16xf32>
      %133 = arith.subf %132, %130 : vector<16x16xf32>
      %134 = math.absf %115 : vector<16x16xf32>
      %cst_51 = arith.constant -2.000000e+01 : f32
      %135 = vector.broadcast %cst_51 : f32 to vector<16x16xf32>
      %136 = arith.mulf %134, %135 : vector<16x16xf32>
      %137 = math.exp %136 : vector<16x16xf32>
      %c0_52 = arith.constant 0 : index
      %c0_53 = arith.constant 0 : index
      %c0_54 = arith.constant 0 : index
      %138 = vector.load %arg5[%c0_52, %c0_53, %c0_54] : memref<3x16x16xf32, #tpu.memory_space<vmem>>, vector<1x16x16xf32>
      %139 = vector.shape_cast %138 : vector<1x16x16xf32> to vector<16x16xf32>
      %140 = vector.shape_cast %137 : vector<16x16xf32> to vector<1x16x16xf32>
      tpu.vector_store %arg5[%c0_52, %c0_53, %c0_54], %140 {strides = array<i32>} : memref<3x16x16xf32, #tpu.memory_space<vmem>>, vector<1x16x16xf32>,
      %141 = math.absf %122 : vector<16x16xf32>
      %cst_55 = arith.constant -2.000000e+01 : f32
      %142 = vector.broadcast %cst_55 : f32 to vector<16x16xf32>
      %143 = arith.mulf %141, %142 : vector<16x16xf32>
      %144 = math.exp %143 : vector<16x16xf32>
      %c1_56 = arith.constant 1 : index
      %c0_57 = arith.constant 0 : index
      %c0_58 = arith.constant 0 : index
      %145 = vector.load %arg5[%c1_56, %c0_57, %c0_58] : memref<3x16x16xf32, #tpu.memory_space<vmem>>, vector<1x16x16xf32>
      %146 = vector.shape_cast %145 : vector<1x16x16xf32> to vector<16x16xf32>
      %147 = vector.shape_cast %144 : vector<16x16xf32> to vector<1x16x16xf32>
      tpu.vector_store %arg5[%c1_56, %c0_57, %c0_58], %147 {strides = array<i32>} : memref<3x16x16xf32, #tpu.memory_space<vmem>>, vector<1x16x16xf32>,
      %148 = math.absf %133 : vector<16x16xf32>
      %cst_59 = arith.constant -2.000000e+01 : f32
      %149 = vector.broadcast %cst_59 : f32 to vector<16x16xf32>
      %150 = arith.mulf %148, %149 : vector<16x16xf32>
      %151 = math.exp %150 : vector<16x16xf32>
      %c2_60 = arith.constant 2 : index
      %c0_61 = arith.constant 0 : index
      %c0_62 = arith.constant 0 : index
      %152 = vector.load %arg5[%c2_60, %c0_61, %c0_62] : memref<3x16x16xf32, #tpu.memory_space<vmem>>, vector<1x16x16xf32>
      %153 = vector.shape_cast %152 : vector<1x16x16xf32> to vector<16x16xf32>
      %154 = vector.shape_cast %151 : vector<16x16xf32> to vector<1x16x16xf32>
      tpu.vector_store %arg5[%c2_60, %c0_61, %c0_62], %154 {strides = array<i32>} : memref<3x16x16xf32, #tpu.memory_space<vmem>>, vector<1x16x16xf32>,
      %cst_63 = arith.constant 0.000000e+00 : f32
      %155 = vector.broadcast %cst_63 : f32 to vector<1x1x1xf32>
      %c0_64 = arith.constant 0 : index
      %c0_65 = arith.constant 0 : index
      %c0_66 = arith.constant 0 : index
      %156 = vector.load %arg4[%c0_64, %c0_65, %c0_66] : memref<1x1x1xf32, #tpu.memory_space<vmem>>, vector<1x1x1xf32>
      tpu.vector_store %arg4[%c0_64, %c0_65, %c0_66], %155 {strides = array<i32>} : memref<1x1x1xf32, #tpu.memory_space<vmem>>, vector<1x1x1xf32>,
    } else {
    }
    %c0 = arith.constant 0 : index
    %c0_1 = arith.constant 0 : index
    %c0_2 = arith.constant 0 : index
    %c0_3 = arith.constant 0 : index
    %3 = vector.load %arg2[%c0, %c0_1, %c0_2, %c0_3] : memref<1x4x16x16xf32, #tpu.memory_space<vmem>>, vector<1x4x16x16xf32>
    %4 = vector.shape_cast %3 : vector<1x4x16x16xf32> to vector<4x16x16xf32>
    %cst = arith.constant 0.000000e+00 : f32
    %5 = vector.broadcast %cst : f32 to vector<4x16x1xf32>
    %6 = vector.extract_strided_slice %4 {offsets = [0, 0, 0], sizes = [4, 16, 15], strides = [1, 1, 1]} : vector<4x16x16xf32> to vector<4x16x15xf32>
    %7 = tpu.concatenate %5, %6 in 2 : vector<4x16x1xf32>, vector<4x16x15xf32> -> vector<4x16x16xf32>
    %cst_4 = arith.constant 0.000000e+00 : f32
    %8 = vector.broadcast %cst_4 : f32 to vector<4x16x1xf32>
    %9 = vector.extract_strided_slice %4 {offsets = [0, 0, 1], sizes = [4, 16, 15], strides = [1, 1, 1]} : vector<4x16x16xf32> to vector<4x16x15xf32>
    %10 = tpu.concatenate %9, %8 in 2 : vector<4x16x15xf32>, vector<4x16x1xf32> -> vector<4x16x16xf32>
    %11 = arith.subf %10, %7 : vector<4x16x16xf32>
    %12 = arith.addf %7, %4 : vector<4x16x16xf32>
    %13 = arith.addf %12, %10 : vector<4x16x16xf32>
    %cst_5 = arith.constant 0.000000e+00 : f32
    %14 = vector.broadcast %cst_5 : f32 to vector<4x1x16xf32>
    %15 = vector.extract_strided_slice %11 {offsets = [0, 0, 0], sizes = [4, 15, 16], strides = [1, 1, 1]} : vector<4x16x16xf32> to vector<4x15x16xf32>
    %16 = tpu.concatenate %14, %15 in 1 : vector<4x1x16xf32>, vector<4x15x16xf32> -> vector<4x16x16xf32>
    %cst_6 = arith.constant 2.000000e+00 : f32
    %17 = vector.broadcast %cst_6 : f32 to vector<4x16x16xf32>
    %18 = arith.mulf %17, %11 : vector<4x16x16xf32>
    %19 = arith.addf %16, %18 : vector<4x16x16xf32>
    %cst_7 = arith.constant 0.000000e+00 : f32
    %20 = vector.broadcast %cst_7 : f32 to vector<4x1x16xf32>
    %21 = vector.extract_strided_slice %11 {offsets = [0, 1, 0], sizes = [4, 15, 16], strides = [1, 1, 1]} : vector<4x16x16xf32> to vector<4x15x16xf32>
    %22 = tpu.concatenate %21, %20 in 1 : vector<4x15x16xf32>, vector<4x1x16xf32> -> vector<4x16x16xf32>
    %23 = arith.addf %19, %22 : vector<4x16x16xf32>
    %24 = arith.mulf %23, %23 : vector<4x16x16xf32>
    %c0_8 = arith.constant 0 : index
    %c0_9 = arith.constant 0 : index
    %c0_10 = arith.constant 0 : index
    %25 = vector.load %arg5[%c0_8, %c0_9, %c0_10] : memref<3x16x16xf32, #tpu.memory_space<vmem>>, vector<1x16x16xf32>
    %26 = vector.shape_cast %25 : vector<1x16x16xf32> to vector<16x16xf32>
    %27 = vector.shape_cast %26 : vector<16x16xf32> to vector<1x16x16xf32>
    %28 = vector.broadcast %27 : vector<1x16x16xf32> to vector<4x16x16xf32>
    %29 = arith.mulf %24, %28 : vector<4x16x16xf32>
    %cst_11 = arith.constant 9.99999997E-7 : f32
    %30 = vector.broadcast %cst_11 : f32 to vector<4x16x16xf32>
    %31 = arith.addf %29, %30 : vector<4x16x16xf32>
    %32 = math.sqrt %31 : vector<4x16x16xf32>
    %cst_12 = arith.constant dense<0.000000e+00> : vector<16x16xf32>
    %33 = vector.multi_reduction <add>, %32, %cst_12 [0] : vector<4x16x16xf32> to vector<16x16xf32>
    %34 = vector.shape_cast %33 : vector<16x16xf32> to vector<1x16x16xf32>
    %cst_13 = arith.constant dense<0.000000e+00> : vector<1xf32>
    %35 = vector.multi_reduction <add>, %34, %cst_13 [1, 2] : vector<1x16x16xf32> to vector<1xf32>
    %36 = vector.shape_cast %35 : vector<1xf32> to vector<1x1x1xf32>
    %37 = vector.extract %36[0, 0, 0] : f32 from vector<1x1x1xf32>
    %cst_14 = arith.constant 1.000000e+01 : f32
    %38 = arith.mulf %cst_14, %37 : f32
    %39 = arith.addf %13, %4 : vector<4x16x16xf32>
    %cst_15 = arith.constant 0.000000e+00 : f32
    %40 = vector.broadcast %cst_15 : f32 to vector<4x1x16xf32>
    %41 = vector.extract_strided_slice %39 {offsets = [0, 1, 0], sizes = [4, 15, 16], strides = [1, 1, 1]} : vector<4x16x16xf32> to vector<4x15x16xf32>
    %42 = tpu.concatenate %41, %40 in 1 : vector<4x15x16xf32>, vector<4x1x16xf32> -> vector<4x16x16xf32>
    %cst_16 = arith.constant 0.000000e+00 : f32
    %43 = vector.broadcast %cst_16 : f32 to vector<4x1x16xf32>
    %44 = vector.extract_strided_slice %39 {offsets = [0, 0, 0], sizes = [4, 15, 16], strides = [1, 1, 1]} : vector<4x16x16xf32> to vector<4x15x16xf32>
    %45 = tpu.concatenate %43, %44 in 1 : vector<4x1x16xf32>, vector<4x15x16xf32> -> vector<4x16x16xf32>
    %46 = arith.subf %42, %45 : vector<4x16x16xf32>
    %47 = arith.mulf %46, %46 : vector<4x16x16xf32>
    %c1 = arith.constant 1 : index
    %c0_17 = arith.constant 0 : index
    %c0_18 = arith.constant 0 : index
    %48 = vector.load %arg5[%c1, %c0_17, %c0_18] : memref<3x16x16xf32, #tpu.memory_space<vmem>>, vector<1x16x16xf32>
    %49 = vector.shape_cast %48 : vector<1x16x16xf32> to vector<16x16xf32>
    %50 = vector.shape_cast %49 : vector<16x16xf32> to vector<1x16x16xf32>
    %51 = vector.broadcast %50 : vector<1x16x16xf32> to vector<4x16x16xf32>
    %52 = arith.mulf %47, %51 : vector<4x16x16xf32>
    %cst_19 = arith.constant 9.99999997E-7 : f32
    %53 = vector.broadcast %cst_19 : f32 to vector<4x16x16xf32>
    %54 = arith.addf %52, %53 : vector<4x16x16xf32>
    %55 = math.sqrt %54 : vector<4x16x16xf32>
    %cst_20 = arith.constant dense<0.000000e+00> : vector<16x16xf32>
    %56 = vector.multi_reduction <add>, %55, %cst_20 [0] : vector<4x16x16xf32> to vector<16x16xf32>
    %57 = vector.shape_cast %56 : vector<16x16xf32> to vector<1x16x16xf32>
    %cst_21 = arith.constant dense<0.000000e+00> : vector<1xf32>
    %58 = vector.multi_reduction <add>, %57, %cst_21 [1, 2] : vector<1x16x16xf32> to vector<1xf32>
    %59 = vector.shape_cast %58 : vector<1xf32> to vector<1x1x1xf32>
    %60 = vector.extract %59[0, 0, 0] : f32 from vector<1x1x1xf32>
    %cst_22 = arith.constant 1.000000e+01 : f32
    %61 = arith.mulf %cst_22, %60 : f32
    %62 = arith.addf %38, %61 : f32
    %cst_23 = arith.constant 0.000000e+00 : f32
    %63 = vector.broadcast %cst_23 : f32 to vector<4x1x16xf32>
    %64 = vector.extract_strided_slice %13 {offsets = [0, 0, 0], sizes = [4, 15, 16], strides = [1, 1, 1]} : vector<4x16x16xf32> to vector<4x15x16xf32>
    %65 = tpu.concatenate %63, %64 in 1 : vector<4x1x16xf32>, vector<4x15x16xf32> -> vector<4x16x16xf32>
    %66 = arith.addf %65, %13 : vector<4x16x16xf32>
    %cst_24 = arith.constant 0.000000e+00 : f32
    %67 = vector.broadcast %cst_24 : f32 to vector<4x1x16xf32>
    %68 = vector.extract_strided_slice %13 {offsets = [0, 1, 0], sizes = [4, 15, 16], strides = [1, 1, 1]} : vector<4x16x16xf32> to vector<4x15x16xf32>
    %69 = tpu.concatenate %68, %67 in 1 : vector<4x15x16xf32>, vector<4x1x16xf32> -> vector<4x16x16xf32>
    %70 = arith.addf %66, %69 : vector<4x16x16xf32>
    %cst_25 = arith.constant 9.000000e+00 : f32
    %71 = vector.broadcast %cst_25 : f32 to vector<4x16x16xf32>
    %72 = arith.mulf %71, %4 : vector<4x16x16xf32>
    %73 = arith.subf %72, %70 : vector<4x16x16xf32>
    %74 = arith.mulf %73, %73 : vector<4x16x16xf32>
    %c2 = arith.constant 2 : index
    %c0_26 = arith.constant 0 : index
    %c0_27 = arith.constant 0 : index
    %75 = vector.load %arg5[%c2, %c0_26, %c0_27] : memref<3x16x16xf32, #tpu.memory_space<vmem>>, vector<1x16x16xf32>
    %76 = vector.shape_cast %75 : vector<1x16x16xf32> to vector<16x16xf32>
    %77 = vector.shape_cast %76 : vector<16x16xf32> to vector<1x16x16xf32>
    %78 = vector.broadcast %77 : vector<1x16x16xf32> to vector<4x16x16xf32>
    %79 = arith.mulf %74, %78 : vector<4x16x16xf32>
    %cst_28 = arith.constant 9.99999997E-7 : f32
    %80 = vector.broadcast %cst_28 : f32 to vector<4x16x16xf32>
    %81 = arith.addf %79, %80 : vector<4x16x16xf32>
    %82 = math.sqrt %81 : vector<4x16x16xf32>
    %cst_29 = arith.constant dense<0.000000e+00> : vector<16x16xf32>
    %83 = vector.multi_reduction <add>, %82, %cst_29 [0] : vector<4x16x16xf32> to vector<16x16xf32>
    %84 = vector.shape_cast %83 : vector<16x16xf32> to vector<1x16x16xf32>
    %cst_30 = arith.constant dense<0.000000e+00> : vector<1xf32>
    %85 = vector.multi_reduction <add>, %84, %cst_30 [1, 2] : vector<1x16x16xf32> to vector<1xf32>
    %86 = vector.shape_cast %85 : vector<1xf32> to vector<1x1x1xf32>
    %87 = vector.extract %86[0, 0, 0] : f32 from vector<1x1x1xf32>
    %88 = arith.addf %62, %87 : f32
    %c0_31 = arith.constant 0 : index
    %c0_32 = arith.constant 0 : index
    %c0_33 = arith.constant 0 : index
    %89 = vector.load %arg4[%c0_31, %c0_32, %c0_33] : memref<1x1x1xf32, #tpu.memory_space<vmem>>, vector<1x1x1xf32>
    %cst_34 = arith.constant 3.906250e-03 : f32
    %90 = arith.mulf %88, %cst_34 : f32
    %91 = vector.broadcast %90 : f32 to vector<1x1x1xf32>
    %92 = arith.addf %89, %91 : vector<1x1x1xf32>
    %c0_35 = arith.constant 0 : index
    %c0_36 = arith.constant 0 : index
    %c0_37 = arith.constant 0 : index
    %93 = vector.load %arg4[%c0_35, %c0_36, %c0_37] : memref<1x1x1xf32, #tpu.memory_space<vmem>>, vector<1x1x1xf32>
    tpu.vector_store %arg4[%c0_35, %c0_36, %c0_37], %92 {strides = array<i32>} : memref<1x1x1xf32, #tpu.memory_space<vmem>>, vector<1x1x1xf32>,
    return
  }
  func.func @transform_0(%arg0: i32, %arg1: i32) -> (i32, i32, i32, i32) {
    %c0_i32 = arith.constant 0 : i32
    %c0_i32_0 = arith.constant 0 : i32
    %c0_i32_1 = arith.constant 0 : i32
    return %arg0, %arg1, %c0_i32, %c0_i32_0 : i32, i32, i32, i32
  }
  func.func @transform_1(%arg0: i32, %arg1: i32) -> (i32, i32, i32) {
    %c0_i32 = arith.constant 0 : i32
    %c0_i32_0 = arith.constant 0 : i32
    %c0_i32_1 = arith.constant 0 : i32
    return %arg0, %c0_i32, %c0_i32_0 : i32, i32, i32
  }
  func.func @transform_2(%arg0: i32, %arg1: i32) -> (i32, i32, i32) {
    %c0_i32 = arith.constant 0 : i32
    %c0_i32_0 = arith.constant 0 : i32
    %c0_i32_1 = arith.constant 0 : i32
    return %arg0, %c0_i32, %c0_i32_0 : i32, i32, i32
  }
}

</mosaic_0001>

<bundles_post_ra>
// kernel: tpu_custom_call.1
= control target key start
LH: loop header
LB: loop body
LE: loop exit
PB: predicated region body
PF: predicated region fallthrough
CT: control target
= control target key end

     0   :  { %7 = vsyncpa [#allocation4], 0  ;;  %s2126_s0 = inlined_call_operand.hbm [shape: f32[2,4,16,16], index: 0, kind: input, shape index: {}]   ;;  %s2127_s1 = inlined_call_operand.hbm [shape: f32[2,16,16], index: 1, kind: input, shape index: {}]   ;;  %s2128_s2 = inlined_call_operand.vmem [shape: f32[2,1,1], index: 2, kind: output, shape index: {}]  }
   0x1   :  { %9 = vsyncpa [#allocation4 + $0x1], 0 }
   0x2   :  { %10 = vsyncpa [#allocation6], 0 }
   0x3   :  { %12 = vsyncpa [#allocation6 + $0x1], 0  ;;  %s1407_s9 = smov 0   ;;  %s1409_s10 = smov 0  }
   0x4   :  { %s1411_s11 = smov 0   ;;  %s1413_s12 = smov 0  }
   0x5   :  { %s1415_s13 = smov 0   ;;  %s1417_s14 = smov 0  }
   0x6 LB: > { %s1125_s15 = sadd.s32 4294967295, %s1383_s14   ;;  %s30_s16 = sadd.s32 1, %s1379_s13  ;;  %s1383_s14 = sphi %s1417_s14, %s18_s14   ;;  %s1379_s13 = sphi %s1415_s13, %s2137_s13   ;;  %s1375_s12 = sphi %s1413_s12, %s2136_s12   ;;  %s1371_s11 = sphi %s1411_s11, %s2135_s11   ;;  %s1367_s10 = sphi %s1409_s10, %s2134_s10   ;;  %s1363_s9 = sphi %s1407_s9, %s2133_s9  }
   0x7   : > { %p32_p0 = scmp.ge.s32.totalorder %s30_s16, 2  ;;  %s39_s17 = sadd.s32 1, %s1371_s11 }
   0x8   : > { %p46_p1 = scmp.ne.s32.totalorder %s1371_s11, %s1367_s10  ;;  %p47_p2 = scmp.eq.s32.totalorder %s1383_s14, 0 }
   0x9   : > { %s2139_s16 = smov (%p32_p0, %s30_s16), 0  ;;  %p52_p4 = scmp.ne.s32.totalorder %s1367_s10, %s1363_s9 }
   0xa   : > { %p1443_p3 = por %p47_p2, %p46_p1  ;;  %s34_s19 = ssub.s32 %s1379_s13, %s2139_s16 }
   0xb   : > { %p53_p5 = scmp.eq.s32.totalorder %s1125_s15, 0  ;;  %p37_p6 = scmp.eq.s32.totalorder %s34_s19, 0 }
   0xc   : > { %p1159_p8 = scmp.lt.s32.totalorder %s1383_s14, 2  ;;  %s1459_s22 = sand.u32 1, %s1371_s11  }
   0xd   : > { %p1450_p7 = por %p53_p5, %p52_p4  ;;  %s1140_s23 = sshll.u32 %s1379_s13, 10 }
   0xe   : > { %s1456_s21 = scalar_select %p37_p6, %s1371_s11, %s39_s17  }
   0xf   : > { %s1129_s24 = sshll.u32 %s1459_s22, 6  ;;  %s141_s27 = scalar_lea.hbm %s2126_s0, %s1140_s23 }
  0x10   : > { %s132_s28 = scalar_lea.vmem [#allocation3], %s1129_s24  ;;  %p1468_p9 = pnand %p1159_p8, %p1443_p3 }
  0x11   : > { %s142_s29 = sshll.u32 %s132_s28, 4  ;;  %s129_s3 = scalar_lea.sflag [#allocation4], %s1459_s22  ;;  %s143_s29 = int_to_ptr.vmem [resolvable:$true] %s142_s29 }
  0x12   : > { %p1275_p10 = pneg %p1468_p9  ;;  %s1286_s4 = scalar_lea.vmem %s143_s29, 1024 }
  0x13   : > { %p1287_p11 = scmp.ne.s32.totalorder %s143_s29, %s1286_s4  ;;  %s1385_s5 = smov [#allocation3]  }
  0x14   : > { %s1291_s6 = sshll.u32 %s1385_s5, 4  ;;  %s1292_s6 = int_to_ptr.vmem [resolvable:$false] %s1291_s6 }
  0x15   : > { %p1289_p12 = pnand %p1287_p11, %p1275_p10  ;;  %s1293_s7 = scalar_lea.vmem %s1292_s6, 2048 }
  0x16   : > { %p1294_p0 = scmp.lt.s32.totalorder %s143_s29, %s1292_s6  ;;  %p1295_p1 = scmp.lt.s32.totalorder %s1293_s7, %s1286_s4 }
  0x17   : > { %p1290_p13 = pneg %p1289_p12 }
  0x18   : > { %p1296_p2 = por %p1295_p1, %p1294_p0 }
  0x1a   : > { %p1297_p3 = pnand %p1296_p2, %p1290_p13 }
  0x1c   : > { %1300 = shalt.err (!%p1297_p3)
}
  0x1d   : > { %s1386_s8 = smov 128   ;;  %s1387_s9 = smov 8  }
  0x1e   : > { %1155 = dma.hbm_to_vmem [thread:$0]  (!%p1468_p9), %s141_s27, 1024, %s143_s29, %s129_s3, %s1386_s8, %s1386_s8, %s1387_s9  }
  0x1f   : > { %p1135_p4 = scmp.ge.s32.totalorder %s1383_s14, 1  ;;  %p171_p5 = scmp.lt.s32.totalorder %s1383_s14, 3 }
  0x20   : > { %s1132_s15 = sshll.u32 %s1459_s22, 4  ;;  %s1141_s18 = sshll.u32 %s1379_s13, 8 }
  0x21   : > { %p1486_p6 = pnand %p1135_p4, %p171_p5  ;;  %s156_s19 = scalar_lea.vmem [#allocation5], %s1132_s15 }
  0x22   : > { %s163_s23 = sshll.u32 %s156_s19, 4  ;;  %s162_s26 = scalar_lea.hbm %s2127_s1, %s1141_s18  ;;  %s164_s23 = int_to_ptr.vmem [resolvable:$true] %s163_s23 }
  0x23   : > { %s153_s28 = scalar_lea.sflag [#allocation6], %s1459_s22  ;;  %s1314_s4 = scalar_lea.vmem %s164_s23, 256 }
  0x24   : > { %p1315_p8 = scmp.ne.s32.totalorder %s164_s23, %s1314_s4  ;;  %s1388_s27 = smov [#allocation5]  }
  0x25   : > { %s1319_s29 = sshll.u32 %s1388_s27, 4  ;;  %s1320_s29 = int_to_ptr.vmem [resolvable:$false] %s1319_s29 }
  0x26   : > { %p1317_p11 = pnand %p1315_p8, %p1275_p10  ;;  %s1321_s3 = scalar_lea.vmem %s1320_s29, 512 }
  0x27   : > { %p1322_p13 = scmp.lt.s32.totalorder %s164_s23, %s1320_s29  ;;  %p1323_p0 = scmp.lt.s32.totalorder %s1321_s3, %s1314_s4 }
  0x28   : > { %p1318_p12 = pneg %p1317_p11 }
  0x29   : > { %p1324_p1 = por %p1323_p0, %p1322_p13 }
  0x2b   : > { %p1325_p2 = pnand %p1324_p1, %p1318_p12 }
  0x2d   : > { %1328 = shalt.err (!%p1325_p2)
}
  0x2e   : > { %1158 = dma.hbm_to_vmem [thread:$0]  (!%p1468_p9), %s162_s26, 256, %s164_s23, %s153_s28, %s1386_s8, %s1386_s8, %s1387_s9  }
  0x2f   : > { %175 = sbr.rel (%p1486_p6) target bundleno = 534 (0x216), region = 28  ;;  %s177_s22 = sand.u32 (!%p1486_p6), 1, %s1367_s10  }
  0x30   : > { %s1136_s5 = sshll.u32 (!%p1486_p6), %s177_s22, 6  ;;  %s178_s6 = scalar_lea.sflag (!%p1486_p6), [#allocation4], %s177_s22 }
  0x31   : > { %s1506_s7 = scalar_lea.vmem (!%p1486_p6), [#allocation3], %s1136_s5 }
  0x34   : > { %1354 = dma.done.wait (%p1450_p7), %s178_s6, 1024  }
  0x35   : > { %1356 = vsyncadd (%p1450_p7), %s178_s6, 4294966272  ;;  %s1137_s30 = sshll.u32 %s177_s22, 4  ;;  %s187_s15 = scalar_lea.sflag [#allocation6], %s177_s22 }
  0x36   : > { %s190_s18 = scalar_lea.vmem [#allocation5], %s1137_s30 }
  0x37   : > { %1358 = dma.done.wait (%p1450_p7), %s187_s15, 256  }
  0x38   : > { %1360 = vsyncadd (%p1450_p7), %s187_s15, 4294967040  ;;  %v222_v0 = vld [vmem:[%s190_s18] sm:$0xff]  ;;  %s1389_s8 = smov 127   ;;  %s1390_s9 = smov 1   ;;  %v1516_v1 = vld [vmem:[%s190_s18 + $0x8] sm:$0xff]  ;;  %vm241_vm0 = vcmask 121856  }
  0x39   : > { %235 = vrot.lane.b32.xlu1 %v222_v0, %s1389_s8  ;;  %226 = vrot.lane.b32.xlu0 %v222_v0, %s1390_s9  ;;  %v1521_v2 = vld [vmem:[%s1506_s7 + $0x8] sm:$0xff]  ;;  %v1524_v3 = vld [vmem:[%s1506_s7] sm:$0xff]  ;;  %vm232_vm1 = vcmask 7168   ;;  %vm254_vm2 = vcmask 1040384   ;;  %vm265_vm3 = vcmask 1046528   ;;  %v308_v25 = vmul.f32 9.0, %v222_v0 }
  0x3a   : > { %v1529_v4 = vld [vmem:[%s1506_s7 + $0x18] sm:$0xff]  ;;  %v1532_v5 = vld [vmem:[%s1506_s7 + $0x10] sm:$0xff]  ;;  %v1537_v6 = vld [vmem:[%s1506_s7 + $0x28] sm:$0xff]  ;;  %v309_v29 = vmul.f32 9.0, %v1516_v1  ;;  %vm320_vm4 = vcmask 130048   ;;  %p215_p7 = scmp.lt.s32.totalorder %s1375_s12, 1 }
  0x3b   : > { %v1540_v7 = vld [vmem:[%s1506_s7 + $0x20] sm:$0xff]  ;;  %v1549_v8 = vld [vmem:[%s1506_s7 + $0x38] sm:$0xff]  ;;  %v1552_v9 = vld [vmem:[%s1506_s7 + $0x30] sm:$0xff] }
  0x3c   : > { %s2141_s12 = smov (!%p215_p7, %s1375_s12), 1 }
  0x3d   : > { %237 = vrot.lane.b32.xlu1 %v1516_v1, %s1389_s8  ;;  %228 = vrot.lane.b32.xlu0 %v1516_v1, %s1390_s9  ;;  %s2101_s19 = scalar_lea.vmem %s2128_s2, %s2141_s12 }
  0x41   : > { %365 = vrot.lane.b32.xlu1 %v1521_v2, %s1390_s9  ;;  %363 = vrot.lane.b32.xlu0 %v1524_v3, %s1390_s9 }
  0x45   : > { %369 = vrot.lane.b32.xlu1 %v1529_v4, %s1390_s9  ;;  %367 = vrot.lane.b32.xlu0 %v1532_v5, %s1390_s9 }
  0x49   : > { %373 = vrot.lane.b32.xlu1 %v1537_v6, %s1390_s9  ;;  %371 = vrot.lane.b32.xlu0 %v1540_v7, %s1390_s9 }
  0x4d   : > { %398 = vrot.lane.b32.xlu1 %v1521_v2, %s1389_s8  ;;  %396 = vrot.lane.b32.xlu0 %v1524_v3, %s1389_s8 }
  0x51   : > { %402 = vrot.lane.b32.xlu1 %v1529_v4, %s1389_s8  ;;  %400 = vrot.lane.b32.xlu0 %v1532_v5, %s1389_s8 }
  0x55   : > { %377 = vrot.lane.b32.xlu1 %v1549_v8, %s1390_s9  ;;  %375 = vrot.lane.b32.xlu0 %v1552_v9, %s1390_s9 }
  0x59   : > { %406 = vrot.lane.b32.xlu1 %v1537_v6, %s1389_s8  ;;  %404 = vrot.lane.b32.xlu0 %v1540_v7, %s1389_s8 }
  0x5d   : > { %410 = vrot.lane.b32.xlu1 %v1549_v8, %s1389_s8  ;;  %408 = vrot.lane.b32.xlu0 %v1552_v9, %s1389_s8 }
  0xab   : > { %v236_v10 = vpop.permute.xlu1 %235  ;;  %v227_v11 = vpop.permute.xlu0 %226 }
  0xac   : > { %v242_v12 = vsel %vm241_vm0, %v236_v10, 0.0  ;;  %v233_v13 = vsel %vm232_vm1, 0.0, %v227_v11 }
  0xad   : > { %v244_v14 = vadd.f32 %v233_v13, %v222_v0  ;;  %v250_v15 = vsub.f32 %v242_v12, %v233_v13 }
  0xaf   : > { %v246_v16 = vadd.f32 %v244_v14, %v242_v12  ;;  %v255_v17 = vrot.slane %v250_v15, 7  ;;  %v238_v18 = vpop.permute.xlu1 %237  ;;  %v229_v19 = vpop.permute.xlu0 %228  ;;  %v261_v23 = vmul.f32 2.0, %v250_v15  ;;  %v266_v30 = vrot.slane %v250_v15, 1 }
  0xb0   : > { %v243_v20 = vsel %vm241_vm0, %v238_v18, 0.0  ;;  %v234_v21 = vsel %vm232_vm1, 0.0, %v229_v19 }
  0xb1   : > { %v248_v22 = vadd.f32 %v246_v16, %v222_v0  ;;  %v292_v24 = vrot.slane %v246_v16, 7  ;;  %v260_v26 = vsel %vm254_vm2, 0.0, %v255_v17  ;;  %v245_v27 = vadd.f32 %v234_v21, %v1516_v1 }
  0xb2   : > { %v251_v28 = vsub.f32 %v243_v20, %v234_v21  ;;  %v300_v35 = vrot.slane %v246_v16, 1  ;;  %v263_v39 = vadd.f32 %v261_v23, %v260_v26 }
  0xb3   : > { %v282_v31 = vrot.slane %v248_v22, 7  ;;  %v297_v32 = vsel %vm254_vm2, 0.0, %v292_v24  ;;  %v366_v33 = vpop.permute.xlu1 %365  ;;  %v364_v34 = vpop.permute.xlu0 %363  ;;  %v247_v36 = vadd.f32 %v245_v27, %v243_v20  ;;  %v276_v40 = vrot.slane %v248_v22, 1 }
  0xb4   : > { %v256_v37 = vrot.slane %v251_v28, 7  ;;  %v262_v38 = vmul.f32 2.0, %v251_v28  ;;  %v298_v41 = vadd.f32 %v297_v32, %v246_v16  ;;  %v267_v42 = vrot.slane %v251_v28, 1 }
  0xb5   : > { %v249_v43 = vadd.f32 %v247_v36, %v1516_v1  ;;  %v293_v45 = vrot.slane %v247_v36, 7  ;;  %v301_v46 = vrot.slane %v247_v36, 1  ;;  %v287_v47 = vsel %vm254_vm2, 0.0, %v282_v31 }
  0xb6   : > { %v257_v44 = vsel %vm254_vm2, %v255_v17, %v256_v37  ;;  %v268_v49 = vsel %vm265_vm3, %v266_v30, %v267_v42  ;;  %v271_v50 = vsel %vm265_vm3, %v267_v42, 0.0 }
  0xb7   : > { %v264_v48 = vadd.f32 %v262_v38, %v257_v44  ;;  %v1573_v51 = vpop.permute.xlu1 %369  ;;  %v1575_v52 = vpop.permute.xlu0 %367  ;;  %v272_v53 = vadd.f32 %v268_v49, %v263_v39  ;;  %v277_v54 = vrot.slane %v249_v43, 1  ;;  %v283_v55 = vrot.slane %v249_v43, 7 }
  0xb8   : > { %v294_v56 = vsel %vm254_vm2, %v292_v24, %v293_v45  ;;  %v302_v59 = vsel %vm265_vm3, %v300_v35, %v301_v46  ;;  %v305_v60 = vsel %vm265_vm3, %v301_v46, 0.0  ;;  %v388_v38 = vsel %vm232_vm1, 0.0, %v364_v34 }
  0xb9   : > { %v273_v57 = vadd.f32 %v271_v50, %v264_v48  ;;  %v299_v58 = vadd.f32 %v294_v56, %v247_v36  ;;  %v278_v61 = vsel %vm265_vm3, %v276_v40, %v277_v54  ;;  %v281_v62 = vsel %vm265_vm3, %v277_v54, 0.0 }
  0xba   : > { %v284_v63 = vsel %vm254_vm2, %v282_v31, %v283_v55  ;;  %v306_v0 = vadd.f32 %v302_v59, %v298_v41  ;;  %v288_v1 = vsub.f32 %v278_v61, %v287_v47  ;;  %v312_v12 = vand.u32 2147483647, %v272_v53 }
  0xbb   : > { %v289_v10 = vsub.f32 %v281_v62, %v284_v63  ;;  %v307_v11 = vadd.f32 %v305_v60, %v299_v58  ;;  %v374_v13 = vpop.permute.xlu1 %373  ;;  %v1583_v14 = vpop.permute.xlu0 %371  ;;  %v313_v16 = vand.u32 2147483647, %v273_v57  ;;  %v389_v31 = vsel %vm232_vm1, 0.0, %v366_v33 }
  0xbc   : > { %v310_v15 = vsub.f32 %v308_v25, %v306_v0  ;;  %v314_v18 = vmul.f32 -20.0, %v312_v12  ;;  %v323_v19 = vand.u32 2147483647, %v288_v1  ;;  %v438_v41 = vadd.f32 %v389_v31, %v1521_v2 }
  0xbd   : > { %v311_v17 = vsub.f32 %v309_v29, %v307_v11  ;;  %v324_v20 = vand.u32 2147483647, %v289_v10  ;;  %v315_v21 = vmul.f32 -20.0, %v313_v16  ;;  %v437_v43 = vadd.f32 %v388_v38, %v1524_v3 }
  0xbe   : > { %v334_v22 = vand.u32 2147483647, %v310_v15  ;;  %v316_v23 = vmul.f32 1.442695, %v314_v18  ;;  %v325_v24 = vmul.f32 -20.0, %v323_v19  ;;  %v1594_v46 = vmul.f32 9.0, %v1521_v2 }
  0xbf   : > { %v326_v26 = vmul.f32 -20.0, %v324_v20  ;;  %v335_v27 = vand.u32 2147483647, %v311_v17  ;;  %v318_v28 = vmul.f32 1.442695, %v315_v21  ;;  %v399_v32 = vpop.permute.xlu1 %398  ;;  %v397_v37 = vpop.permute.xlu0 %396  ;;  %v1597_v34 = vmul.f32 9.0, %v1524_v3 }
  0xc0   : > { %v336_v30 = vmul.f32 -20.0, %v334_v22  ;;  %1213 = vpow2.f32 %v316_v23  ;;  %v327_v35 = vmul.f32 1.442695, %v325_v24  ;;  %v422_v40 = vsel %vm241_vm0, %v399_v32, 0.0 }
  0xc1   : > { %v329_v36 = vmul.f32 1.442695, %v326_v26  ;;  %v337_v25 = vmul.f32 -20.0, %v335_v27  ;;  %1215 = vpow2.f32 %v318_v28  ;;  %v430_v42 = vsub.f32 %v422_v40, %v389_v31 }
  0xc2   : > { %v338_v29 = vmul.f32 1.442695, %v336_v30  ;;  %1217 = vpow2.f32 %v327_v35  ;;  %v421_v33 = vsel %vm241_vm0, %v397_v37, 0.0  ;;  %v1591_v45 = vadd.f32 %v438_v41, %v422_v40 }
  0xc3   : > { %v340_v39 = vmul.f32 1.442695, %v337_v25  ;;  %1219 = vpow2.f32 %v329_v36  ;;  %v429_v44 = vsub.f32 %v421_v33, %v388_v38  ;;  %v1599_v47 = vadd.f32 %v437_v43, %v421_v33  ;;  %v403_v58 = vpop.permute.xlu1 %402  ;;  %v401_v27 = vpop.permute.xlu0 %400 }
  0xc4   : > { %1221 = vpow2.f32 %v338_v29  ;;  %v1602_v48 = vmul.f32 9.0, %v1529_v4  ;;  %v1605_v49 = vmul.f32 9.0, %v1532_v5  ;;  %v463_v50 = vrot.slane %v430_v42, 7 }
  0xc5   : > { %1223 = vpow2.f32 %v340_v39  ;;  %v462_v53 = vrot.slane %v429_v44, 7  ;;  %v1608_v54 = vmul.f32 9.0, %v1537_v6  ;;  %v1611_v55 = vmul.f32 9.0, %v1540_v7 }
  0xc6   : > { %v1614_v56 = vmul.f32 9.0, %v1549_v8  ;;  %v391_v57 = vsel %vm232_vm1, 0.0, %v1573_v51  ;;  %v1619_v59 = vmul.f32 9.0, %v1552_v9  ;;  %v390_v60 = vsel %vm232_vm1, 0.0, %v1575_v52 }
  0xc7   : > { %v1624_v61 = vsel %vm232_vm1, 0.0, %v374_v13  ;;  %v646_v62 = vadd.f32 %v1591_v45, %v1521_v2  ;;  %v487_v63 = vmul.f32 2.0, %v430_v42  ;;  %v837_v0 = vrot.slane %v1591_v45, 7 }
  0xc8   : > { %v645_v1 = vadd.f32 %v1599_v47, %v1524_v3  ;;  %v836_v51 = vrot.slane %v1599_v47, 7  ;;  %v440_v10 = vadd.f32 %v391_v57, %v1529_v4  ;;  %v464_v11 = vsel %vm254_vm2, %v462_v53, %v463_v50 }
  0xc9   : > { %v486_v12 = vmul.f32 2.0, %v429_v44  ;;  %v424_v52 = vsel %vm241_vm0, %v403_v58, 0.0  ;;  %v504_v13 = vrot.slane %v430_v42, 1  ;;  %v869_v15 = vrot.slane %v1591_v45, 1 }
  0xca   : > { %v482_v2 = vsel %vm254_vm2, 0.0, %v462_v53  ;;  %v503_v16 = vrot.slane %v429_v44, 1  ;;  %v439_v18 = vadd.f32 %v390_v60, %v1532_v5  ;;  %v1640_v3 = vadd.f32 %v1624_v61, %v1537_v6 }
  0xcb   : > { %v1644_v19 = vsel %vm232_vm1, 0.0, %v1583_v14  ;;  %v662_v20 = vrot.slane %v646_v62, 1  ;;  %v495_v22 = vadd.f32 %v487_v63, %v464_v11  ;;  %v661_v23 = vrot.slane %v645_v1, 1 }
  0xcc   : > { %v838_v24 = vsel %vm254_vm2, %v836_v51, %v837_v0  ;;  %v856_v26 = vsel %vm254_vm2, 0.0, %v836_v51  ;;  %v686_v30 = vrot.slane %v646_v62, 7  ;;  %v494_v31 = vadd.f32 %v486_v12, %v482_v2 }
  0xcd   : > { %v1214_v17 = vpop.eup %1213  ;;  %v685_v32 = vrot.slane %v645_v1, 7  ;;  %v1650_v35 = vsub.f32 %v424_v52, %v391_v57  ;;  %v523_v36 = vsel %vm265_vm3, %v504_v13, 0.0  ;;  %v888_v25 = vsel %vm265_vm3, %v869_v15, 0.0 }
  0xce   : > { %v1216_v21 = vpop.eup %1215  ;;  %321 = vst.msk [vmem:[#allocation2] sm:$0xff] %vm320_vm4, %v1214_v17  ;;  %v505_v37 = vsel %vm265_vm3, %v503_v16, %v504_v13  ;;  %v868_v29 = vrot.slane %v1599_v47, 1  ;;  %v681_v39 = vsel %vm265_vm3, %v662_v20, 0.0  ;;  %v860_v40 = vadd.f32 %v856_v26, %v1599_v47 }
  0xcf   : > { %v1218_v28 = vpop.eup %1217  ;;  %322 = vst.msk [vmem:[#allocation2 + $0x8] sm:$0xff] %vm320_vm4, %v1216_v21  ;;  %v861_v41 = vadd.f32 %v838_v24, %v1591_v45  ;;  %v423_v42 = vsel %vm241_vm0, %v401_v27, 0.0  ;;  %v528_v43 = vadd.f32 %v523_v36, %v495_v22  ;;  %v663_v44 = vsel %vm265_vm3, %v661_v23, %v662_v20 }
  0xd0   : > { %v1220_v14 = vpop.eup %1219  ;;  %332 = vst.msk [vmem:[#allocation2 + $0x10] sm:$0xff] %vm320_vm4, %v1218_v28  ;;  %v1664_v50 = vadd.f32 %v440_v10, %v424_v52  ;;  %v431_v53 = vsub.f32 %v423_v42, %v390_v60  ;;  %v527_v57 = vadd.f32 %v505_v37, %v494_v31  ;;  %v687_v58 = vsel %vm254_vm2, %v685_v32, %v686_v30  ;;  %v378_v30 = vpop.permute.xlu1 %377 }
  0xd1   : > { %v1222_v38 = vpop.eup %1221  ;;  %333 = vst.msk [vmem:[#allocation2 + $0x18] sm:$0xff] %vm320_vm4, %v1220_v14  ;;  %v466_v47 = vrot.slane %v1650_v35, 7  ;;  %v1669_v62 = vadd.f32 %v439_v18, %v423_v42  ;;  %v705_v45 = vsel %vm254_vm2, 0.0, %v685_v32  ;;  %v870_v63 = vsel %vm265_vm3, %v868_v29, %v869_v15 }
  0xd2   : > { %v1224_v33 = vpop.eup %1223  ;;  %343 = vst.msk [vmem:[#allocation2 + $0x20] sm:$0xff] %vm320_vm4, %v1222_v38  ;;  %v465_v0 = vrot.slane %v431_v53, 7  ;;  %v488_v1 = vmul.f32 2.0, %v431_v53  ;;  %v892_v51 = vadd.f32 %v870_v63, %v860_v40  ;;  %v893_v11 = vadd.f32 %v888_v25, %v861_v41 }
  0xd3   : > { %344 = vst.msk [vmem:[#allocation2 + $0x28] sm:$0xff] %vm320_vm4, %v1224_v33  ;;  %v489_v10 = vmul.f32 2.0, %v1650_v35  ;;  %v507_v60 = vrot.slane %v1650_v35, 1  ;;  %v648_v52 = vadd.f32 %v1664_v50, %v1529_v4  ;;  %v506_v2 = vrot.slane %v431_v53, 1 }
  0xd4   : > { %v483_v13 = vsel %vm254_vm2, 0.0, %v465_v0  ;;  %v647_v16 = vadd.f32 %v1669_v62, %v1532_v5  ;;  %v1684_v15 = vadd.f32 %v1644_v19, %v1540_v7  ;;  %v535_v17 = vmul.f32 %v527_v57, %v527_v57 }
  0xd5   : > { %v1675_v12 = vld [vmem:[#allocation2] sm:$0xff]  ;;  %v467_v18 = vsel %vm254_vm2, %v465_v0, %v466_v47  ;;  %v496_v20 = vadd.f32 %v488_v1, %v483_v13  ;;  %v536_v21 = vmul.f32 %v528_v43, %v528_v43  ;;  %v709_v22 = vsub.f32 %v663_v44, %v705_v45 }
  0xd6   : > { %v710_v23 = vsub.f32 %v681_v39, %v687_v58  ;;  %v840_v24 = vrot.slane %v1664_v50, 7  ;;  %v1688_v4 = vld [vmem:[#allocation2 + $0x8] sm:$0xff]  ;;  %v545_v26 = vmul.f32 %v1675_v12, %v535_v17  ;;  %v908_v27 = vsub.f32 %v1597_v34, %v892_v51  ;;  %v376_v39 = vpop.permute.xlu0 %375 }
  0xd7   : > { %v909_v5 = vsub.f32 %v1594_v46, %v893_v11  ;;  %v872_v28 = vrot.slane %v1664_v50, 1  ;;  %v665_v31 = vrot.slane %v648_v52, 1  ;;  %v497_v32 = vadd.f32 %v489_v10, %v467_v18  ;;  %v1695_v36 = vld [vmem:[#allocation2 + $0x10] sm:$0xff] }
  0xd8   : > { %v508_v35 = vsel %vm265_vm3, %v506_v2, %v507_v60  ;;  %v664_v14 = vrot.slane %v647_v16, 1  ;;  %v689_v25 = vrot.slane %v648_v52, 7  ;;  %v688_v29 = vrot.slane %v647_v16, 7  ;;  %v1700_v42 = vld [vmem:[#allocation2 + $0x18] sm:$0xff] }
  0xd9   : > { %v529_v37 = vadd.f32 %v508_v35, %v496_v20  ;;  %v839_v38 = vrot.slane %v1669_v62, 7  ;;  %v546_v34 = vmul.f32 %v1688_v4, %v536_v21  ;;  %v717_v40 = vmul.f32 %v709_v22, %v709_v22  ;;  %v1704_v53 = vld [vmem:[#allocation2 + $0x20] sm:$0xff] }
  0xda   : > { %v718_v46 = vmul.f32 %v710_v23, %v710_v23  ;;  %v524_v41 = vsel %vm265_vm3, %v507_v60, 0.0  ;;  %v1702_v33 = vadd.f32 1e-06, %v545_v26  ;;  %v916_v43 = vmul.f32 %v908_v27, %v908_v27  ;;  %v1707_v58 = vld [vmem:[#allocation2 + $0x28] sm:$0xff]  ;;  %v407_v60 = vpop.permute.xlu1 %406  ;;  %v405_v21 = vpop.permute.xlu0 %404 }
  0xdb   : > { %v917_v44 = vmul.f32 %v909_v5, %v909_v5  ;;  %v889_v57 = vsel %vm265_vm3, %v872_v28, 0.0  ;;  %v728_v47 = vmul.f32 %v1695_v36, %v717_v40  ;;  %v682_v45 = vsel %vm265_vm3, %v665_v31, 0.0 }
  0xdc   : > { %v530_v63 = vadd.f32 %v524_v41, %v497_v32  ;;  %v666_v0 = vsel %vm265_vm3, %v664_v14, %v665_v31  ;;  %v537_v1 = vmul.f32 %v529_v37, %v529_v37  ;;  %v690_v51 = vsel %vm254_vm2, %v688_v29, %v689_v25 }
  0xdd   : > { %v706_v11 = vsel %vm254_vm2, 0.0, %v688_v29  ;;  %v841_v10 = vsel %vm254_vm2, %v839_v38, %v840_v24  ;;  %v1715_v52 = vadd.f32 1e-06, %v546_v34  ;;  %v729_v13 = vmul.f32 %v1700_v42, %v718_v46 }
  0xde   : > { %v927_v2 = vmul.f32 %v1704_v53, %v916_v43  ;;  %v871_v16 = vrot.slane %v1669_v62, 1  ;;  %1225 = vrsqrt.f32 %v1702_v33  ;;  %v928_v17 = vmul.f32 %v1707_v58, %v917_v44 }
  0xdf   : > { %v547_v18 = vmul.f32 %v1675_v12, %v537_v1  ;;  %v857_v20 = vsel %vm254_vm2, 0.0, %v839_v38  ;;  %v711_v22 = vsub.f32 %v666_v0, %v706_v11  ;;  %v712_v23 = vsub.f32 %v682_v45, %v690_v51  ;;  %v411_v51 = vpop.permute.xlu1 %410 }
  0xe0   : > { %v863_v24 = vadd.f32 %v841_v10, %v1664_v50  ;;  %v426_v26 = vsel %vm241_vm0, %v407_v60, 0.0  ;;  %v1726_v27 = vadd.f32 1e-06, %v728_v47  ;;  %v538_v5 = vmul.f32 %v530_v63, %v530_v63 }
  0xe1   : > { %v434_v31 = vsub.f32 %v426_v26, %v1624_v61  ;;  %v1730_v32 = vadd.f32 %v1640_v3, %v426_v26  ;;  %v1732_v35 = vadd.f32 1e-06, %v729_v13  ;;  %v1734_v14 = vadd.f32 1e-06, %v927_v2 }
  0xe2   : > { %v862_v25 = vadd.f32 %v857_v20, %v1669_v62  ;;  %v425_v37 = vsel %vm241_vm0, %v405_v21, 0.0  ;;  %v1738_v29 = vadd.f32 1e-06, %v928_v17  ;;  %v1741_v50 = vmul.f32 %v1688_v4, %v538_v5 }
  0xe3   : > { %v873_v38 = vsel %vm265_vm3, %v871_v16, %v872_v28  ;;  %v395_v61 = vsel %vm232_vm1, 0.0, %v378_v30  ;;  %v1745_v34 = vadd.f32 1e-06, %v547_v18  ;;  %v719_v3 = vmul.f32 %v711_v22, %v711_v22 }
  0xe4   : > { %v720_v40 = vmul.f32 %v712_v23, %v712_v23  ;;  %v895_v46 = vadd.f32 %v889_v57, %v863_v24  ;;  %v469_v41 = vrot.slane %v434_v31, 7  ;;  %v650_v62 = vadd.f32 %v1730_v32, %v1537_v6 }
  0xe5   : > { %v433_v43 = vsub.f32 %v425_v37, %v1644_v19  ;;  %v449_v44 = vadd.f32 %v1684_v15, %v425_v37  ;;  %v730_v47 = vmul.f32 %v1695_v36, %v719_v3  ;;  %v894_v45 = vadd.f32 %v873_v38, %v862_v25 }
  0xe6   : > { %v444_v28 = vadd.f32 %v395_v61, %v1549_v8  ;;  %v1754_v30 = vsel %vm232_vm1, 0.0, %v376_v39  ;;  %v731_v63 = vmul.f32 %v1700_v42, %v720_v40  ;;  %v491_v0 = vmul.f32 2.0, %v434_v31 }
  0xe7   : > { %v843_v57 = vrot.slane %v1730_v32, 7  ;;  %v468_v1 = vrot.slane %v433_v43, 7  ;;  %v875_v6 = vrot.slane %v1730_v32, 1  ;;  %v490_v19 = vmul.f32 2.0, %v433_v43 }
  0xe8   : > { %v649_v15 = vadd.f32 %v449_v44, %v1540_v7  ;;  %v842_v11 = vrot.slane %v449_v44, 7  ;;  %v668_v10 = vrot.slane %v650_v62, 1  ;;  %v874_v39 = vrot.slane %v449_v44, 1 }
  0xe9   : > { %v470_v60 = vsel %vm254_vm2, %v468_v1, %v469_v41  ;;  %v484_v13 = vsel %vm254_vm2, 0.0, %v468_v1  ;;  %v692_v2 = vrot.slane %v650_v62, 7  ;;  %v428_v18 = vsel %vm241_vm0, %v411_v51, 0.0 }
  0xea   : > { %v667_v16 = vrot.slane %v649_v15, 1  ;;  %v691_v17 = vrot.slane %v649_v15, 7  ;;  %v510_v20 = vrot.slane %v434_v31, 1  ;;  %v509_v21 = vrot.slane %v433_v43, 1 }
  0xeb   : > { %v844_v22 = vsel %vm254_vm2, %v842_v11, %v843_v57  ;;  %v858_v23 = vsel %vm254_vm2, 0.0, %v842_v11  ;;  %v1765_v24 = vpop.eup %1225  ;;  %v910_v7 = vsub.f32 %v1605_v49, %v894_v45  ;;  %v911_v26 = vsub.f32 %v1602_v48, %v895_v46 }
  0xec   : > { %v498_v5 = vadd.f32 %v490_v19, %v484_v13  ;;  %v499_v25 = vadd.f32 %v491_v0, %v470_v60  ;;  %v683_v37 = vsel %vm265_vm3, %v668_v10, 0.0  ;;  %v864_v38 = vadd.f32 %v858_v23, %v449_v44 }
  0xed   : > { %v876_v3 = vsel %vm265_vm3, %v874_v39, %v875_v6  ;;  %v1771_v40 = vadd.f32 %v444_v28, %v428_v18  ;;  %v669_v31 = vsel %vm265_vm3, %v667_v16, %v668_v10  ;;  %v693_v41 = vsel %vm254_vm2, %v691_v17, %v692_v2 }
  0xee   : > { %v707_v62 = vsel %vm254_vm2, 0.0, %v691_v17  ;;  %v865_v43 = vadd.f32 %v844_v22, %v1730_v32  ;;  %v525_v49 = vsel %vm265_vm3, %v510_v20, 0.0  ;;  %v511_v48 = vsel %vm265_vm3, %v509_v21, %v510_v20 }
  0xef   : > { %v896_v46 = vadd.f32 %v876_v3, %v864_v38  ;;  %v436_v45 = vsub.f32 %v428_v18, %v395_v61  ;;  %1227 = vrsqrt.f32 %v1745_v34  ;;  %v443_v44 = vadd.f32 %v1754_v30, %v1552_v9  ;;  %v409_v61 = vpop.permute.xlu0 %408 }
  0xf0   : > { %v531_v28 = vadd.f32 %v511_v48, %v498_v5  ;;  %v532_v0 = vadd.f32 %v525_v49, %v499_v25  ;;  %v919_v57 = vmul.f32 %v911_v26, %v911_v26  ;;  %v890_v1 = vsel %vm265_vm3, %v875_v6, 0.0 }
  0xf1   : > { %v713_v51 = vsub.f32 %v669_v31, %v707_v62  ;;  %v714_v19 = vsub.f32 %v683_v37, %v693_v41  ;;  %v1783_v15 = vadd.f32 1e-06, %v730_v47  ;;  %v918_v32 = vmul.f32 %v910_v7, %v910_v7 }
  0xf2   : > { %v897_v11 = vadd.f32 %v890_v1, %v865_v43  ;;  %v652_v10 = vadd.f32 %v1771_v40, %v1549_v8  ;;  %v1787_v60 = vadd.f32 1e-06, %v731_v63  ;;  %v1790_v13 = vmul.f32 %v1707_v58, %v919_v57 }
  0xf3   : > { %v912_v39 = vsub.f32 %v1611_v55, %v896_v46  ;;  %v513_v2 = vrot.slane %v436_v45, 1  ;;  %v1794_v6 = vmul.f32 %v1704_v53, %v918_v32  ;;  %v539_v16 = vmul.f32 %v531_v28, %v531_v28 }
  0xf4   : > { %v540_v47 = vmul.f32 %v532_v0, %v532_v0  ;;  %v472_v17 = vrot.slane %v436_v45, 7  ;;  %v721_v18 = vmul.f32 %v713_v51, %v713_v51  ;;  %v722_v20 = vmul.f32 %v714_v19, %v714_v19 }
  0xf5   : > { %v493_v21 = vmul.f32 2.0, %v436_v45  ;;  %v427_v8 = vsel %vm241_vm0, %v409_v61, 0.0  ;;  %v913_v63 = vsub.f32 %v1608_v54, %v897_v11  ;;  %v671_v22 = vrot.slane %v652_v10, 1 }
  0xf6   : > { %v435_v23 = vsub.f32 %v427_v8, %v1754_v30  ;;  %v451_v7 = vadd.f32 %v443_v44, %v427_v8  ;;  %v920_v26 = vmul.f32 %v912_v39, %v912_v39  ;;  %v526_v55 = vsel %vm265_vm3, %v513_v2, 0.0 }
  0xf7   : > { %v846_v5 = vrot.slane %v1771_v40, 7  ;;  %1229 = vrsqrt.f32 %v1726_v27  ;;  %v695_v25 = vrot.slane %v652_v10, 7  ;;  %v878_v31 = vrot.slane %v1771_v40, 1 }
  0xf8   : > { %v471_v37 = vrot.slane %v435_v23, 7  ;;  %v492_v38 = vmul.f32 2.0, %v435_v23  ;;  %v651_v3 = vadd.f32 %v451_v7, %v1552_v9  ;;  %v512_v41 = vrot.slane %v435_v23, 1 }
  0xf9   : > { %v845_v54 = vrot.slane %v451_v7, 7  ;;  %1231 = vrsqrt.f32 %v1732_v35  ;;  %v684_v30 = vsel %vm265_vm3, %v671_v22, 0.0  ;;  %v877_v57 = vrot.slane %v451_v7, 1 }
  0xfa   : > { %v473_v62 = vsel %vm254_vm2, %v471_v37, %v472_v17  ;;  %v485_v43 = vsel %vm254_vm2, 0.0, %v471_v37  ;;  %v670_v49 = vrot.slane %v651_v3, 1  ;;  %v694_v45 = vrot.slane %v651_v3, 7 }
  0xfb   : > { %v500_v48 = vadd.f32 %v492_v38, %v485_v43  ;;  %v501_v46 = vadd.f32 %v493_v21, %v473_v62  ;;  %v847_v44 = vsel %vm254_vm2, %v845_v54, %v846_v5  ;;  %v859_v28 = vsel %vm254_vm2, 0.0, %v845_v54 }
  0xfc   : > { %v672_v9 = vsel %vm265_vm3, %v670_v49, %v671_v22  ;;  %v867_v0 = vadd.f32 %v847_v44, %v1771_v40  ;;  %v1812_v1 = vpop.eup %1227  ;;  %v921_v51 = vmul.f32 %v913_v63, %v913_v63  ;;  %v514_v19 = vsel %vm265_vm3, %v512_v41, %v513_v2 }
  0xfd   : > { %v696_v32 = vsel %vm254_vm2, %v694_v45, %v695_v25  ;;  %v708_v11 = vsel %vm254_vm2, 0.0, %v694_v45  ;;  %v533_v10 = vadd.f32 %v514_v19, %v500_v48  ;;  %v866_v17 = vadd.f32 %v859_v28, %v451_v7 }
  0xfe   : > { %v715_v61 = vsub.f32 %v672_v9, %v708_v11  ;;  %v716_v39 = vsub.f32 %v684_v30, %v696_v32  ;;  %v549_v21 = vmul.f32 %v1675_v12, %v539_v16  ;;  %v732_v8 = vmul.f32 %v1695_v36, %v721_v18 }
  0xff   : > { %v891_v40 = vsel %vm265_vm3, %v878_v31, 0.0  ;;  %v534_v22 = vadd.f32 %v526_v55, %v501_v46  ;;  %v879_v63 = vsel %vm265_vm3, %v877_v57, %v878_v31  ;;  %v550_v25 = vmul.f32 %v1688_v4, %v540_v47 }
 0x100   : > { %v723_v23 = vmul.f32 %v715_v61, %v715_v61  ;;  %v724_v5 = vmul.f32 %v716_v39, %v716_v39  ;;  %v899_v2 = vadd.f32 %v891_v40, %v867_v0  ;;  %v733_v37 = vmul.f32 %v1700_v42, %v722_v20 }
 0x101   : > { %v898_v38 = vadd.f32 %v879_v63, %v866_v17  ;;  %1233 = vrsqrt.f32 %v1783_v15  ;;  %v931_v7 = vmul.f32 %v1704_v53, %v920_v26  ;;  %v932_v16 = vmul.f32 %v1707_v58, %v921_v51 }
 0x102   : > { %v541_v18 = vmul.f32 %v533_v10, %v533_v10  ;;  %v734_v3 = vmul.f32 %v1695_v36, %v723_v23  ;;  %v1828_v55 = vadd.f32 1e-06, %v1741_v50  ;;  %v1830_v41 = vadd.f32 1e-06, %v732_v8 }
 0x103   : > { %v542_v31 = vmul.f32 %v534_v22, %v534_v22  ;;  %v735_v47 = vmul.f32 %v1700_v42, %v724_v5  ;;  %v1834_v20 = vadd.f32 1e-06, %v1794_v6  ;;  %v1837_v30 = vadd.f32 1e-06, %v1790_v13 }
 0x104   : > { %v1230_v54 = vpop.eup %1229  ;;  %v1839_v26 = vadd.f32 1e-06, %v549_v21  ;;  %v915_v62 = vsub.f32 %v1614_v56, %v899_v2  ;;  %v1842_v36 = vadd.f32 1e-06, %v550_v25  ;;  %v1844_v50 = vadd.f32 1e-06, %v733_v37 }
 0x105   : > { %v914_v43 = vsub.f32 %v1619_v59, %v898_v38  ;;  %1235 = vrsqrt.f32 %v1787_v60  ;;  %v1848_v49 = vadd.f32 1e-06, %v931_v7  ;;  %v1850_v6 = vadd.f32 1e-06, %v932_v16 }
 0x106   : > { %v1232_v42 = vpop.eup %1231  ;;  %v551_v13 = vmul.f32 %v1675_v12, %v541_v18  ;;  %v1853_v48 = vadd.f32 1e-06, %v734_v3  ;;  %v552_v46 = vmul.f32 %v1688_v4, %v542_v31  ;;  %v1856_v56 = vadd.f32 1e-06, %v735_v47 }
 0x107   : > { %v745_v45 = vmul.f32 %v1230_v54, %v1726_v27  ;;  %1237 = vrsqrt.f32 %v1830_v41  ;;  %v923_v59 = vmul.f32 %v915_v62, %v915_v62  ;;  %vm746_vm5 = vcmp.eq.f32.partialorder %v1726_v27, inf }
 0x108   : > { %vm748_vm6 = vcmp.eq.f32.partialorder %v1726_v27, 0.0  ;;  %v752_v44 = vmul.f32 %v1232_v42, %v1732_v35  ;;  %v922_v9 = vmul.f32 %v914_v43, %v914_v43  ;;  %v749_v12 = vand.u32 2147483648, %v1726_v27 }
 0x109   : > { %vm753_vm7 = vcmp.eq.f32.partialorder %v1732_v35, inf  ;;  %1239 = vrsqrt.f32 %v1844_v50  ;;  %v1866_v4 = vadd.f32 1e-06, %v551_v13  ;;  %vm755_vm8 = vcmp.eq.f32.partialorder %v1732_v35, 0.0 }
 0x10a   : > { %v756_v28 = vand.u32 2147483648, %v1732_v35  ;;  %1241 = vrsqrt.f32 %v1853_v48  ;;  %v1871_v0 = vadd.f32 1e-06, %v552_v46  ;;  %v747_v57 = vsel %vm746_vm5, %v1726_v27, %v745_v45 }
 0x10b   : > { %vm760_vm9 = vcmp.eq.f32.partialorder %v1783_v15, inf  ;;  %1243 = vrsqrt.f32 %v1856_v56  ;;  %v1877_v51 = vmul.f32 %v1707_v58, %v923_v59  ;;  %v754_v19 = vsel %vm753_vm7, %v1732_v35, %v752_v44 }
 0x10c   : > { %vm762_vm10 = vcmp.eq.f32.partialorder %v1783_v15, 0.0  ;;  %v763_v32 = vand.u32 2147483648, %v1783_v15  ;;  %v1883_v11 = vmul.f32 %v1704_v53, %v922_v9  ;;  %vm767_vm11 = vcmp.eq.f32.partialorder %v1787_v60, inf }
 0x10d   : > { %vm769_vm12 = vcmp.eq.f32.partialorder %v1787_v60, 0.0  ;;  %v562_v10 = vmul.f32 %v1765_v24, %v1702_v33  ;;  %v750_v58 = vsel %vm748_vm6, %v749_v12, %v747_v57  ;;  %v770_v39 = vand.u32 2147483648, %v1787_v60 }
 0x10e   : > { %v1234_v61 = vpop.eup %1233  ;;  %vm774_vm13 = vcmp.eq.f32.partialorder %v1830_v41, inf  ;;  %1245 = vrsqrt.f32 %v1715_v52  ;;  %v757_v53 = vsel %vm755_vm8, %v756_v28, %v754_v19  ;;  %vm776_vm14 = vcmp.eq.f32.partialorder %v1830_v41, 0.0 }
 0x10f   : > { %v759_v17 = vmul.f32 %v1234_v61, %v1783_v15  ;;  %v777_v21 = vand.u32 2147483648, %v1830_v41  ;;  %vm781_vm15 = vcmp.eq.f32.partialorder %v1844_v50, inf  ;;  %v784_v27 = vand.u32 2147483648, %v1844_v50 }
 0x110   : > { %v791_v24 = vand.u32 2147483648, %v1853_v48  ;;  %vm563_vm0 = vcmp.eq.f32.partialorder %v1702_v33, inf  ;;  %1247 = vrsqrt.f32 %v1828_v55  ;;  %vm783_vm1 = vcmp.eq.f32.partialorder %v1844_v50, 0.0 }
 0x111   : > { %v761_v35 = vsel %vm760_vm9, %v1783_v15, %v759_v17  ;;  %vm788_vm2 = vcmp.eq.f32.partialorder %v1853_v48, inf  ;;  %v798_v8 = vand.u32 2147483648, %v1856_v56  ;;  %v800_v40 = vsel %vm320_vm4, %v750_v58, 0.0 }
 0x112   : > { %v564_v22 = vsel %vm563_vm0, %v1702_v33, %v562_v10  ;;  %v1236_v23 = vpop.eup %1235  ;;  %v764_v5 = vsel %vm762_vm10, %v763_v32, %v761_v35  ;;  %vm790_vm3 = vcmp.eq.f32.partialorder %v1853_v48, 0.0  ;;  %vm795_vm5 = vcmp.eq.f32.partialorder %v1856_v56, inf }
 0x113   : > { %v566_v63 = vand.u32 2147483648, %v1702_v33  ;;  %v576_v2 = vmul.f32 %v1812_v1, %v1745_v34  ;;  %1249 = vrsqrt.f32 %v1839_v26  ;;  %v766_v25 = vmul.f32 %v1236_v23, %v1787_v60 }
 0x114   : > { %vm797_vm6 = vcmp.eq.f32.partialorder %v1856_v56, 0.0  ;;  %v801_v37 = vsel %vm320_vm4, %v764_v5, 0.0  ;;  %v807_v15 = vsel %vm320_vm4, %v757_v53, 0.0  ;;  %vm565_vm7 = vcmp.eq.f32.partialorder %v1702_v33, 0.0  ;;  %v1238_v38 = vpop.eup %1237 }
 0x115   : > { %v567_v7 = vsel %vm565_vm7, %v566_v63, %v564_v22  ;;  %v573_v16 = vand.u32 2147483648, %v1715_v52  ;;  %vm577_vm8 = vcmp.eq.f32.partialorder %v1745_v34, inf  ;;  %1251 = vrsqrt.f32 %v1842_v36 }
 0x116   : > { %v768_v1 = vsel %vm767_vm11, %v1787_v60, %v766_v25  ;;  %v773_v18 = vmul.f32 %v1238_v38, %v1830_v41  ;;  %vm570_vm9 = vcmp.eq.f32.partialorder %v1715_v52, inf  ;;  %vm579_vm10 = vcmp.eq.f32.partialorder %v1745_v34, 0.0  ;;  %v1240_v3 = vpop.eup %1239 }
 0x117   : > { %v580_v33 = vand.u32 2147483648, %v1745_v34  ;;  %v771_v31 = vsel %vm769_vm12, %v770_v39, %v768_v1  ;;  %v802_v47 = vadd.f32 %v801_v37, %v800_v40  ;;  %vm572_vm0 = vcmp.eq.f32.partialorder %v1715_v52, 0.0  ;;  %v1242_v62 = vpop.eup %1241 }
 0x118   : > { %v578_v54 = vsel %vm577_vm8, %v1745_v34, %v576_v2  ;;  %1253 = vrsqrt.f32 %v1866_v4  ;;  %v775_v43 = vsel %vm774_vm13, %v1830_v41, %v773_v18  ;;  %v780_v42 = vmul.f32 %v1240_v3, %v1844_v50  ;;  %v1244_v60 = vpop.eup %1243 }
 0x119   : > { %v808_v13 = vsel %vm320_vm4, %v771_v31, 0.0  ;;  %vm584_vm11 = vcmp.eq.f32.partialorder %v1828_v55, inf  ;;  %v778_v46 = vsel %vm776_vm14, %v777_v21, %v775_v43  ;;  %v787_v45 = vmul.f32 %v1242_v62, %v1853_v48 }
 0x11a   : > { %v809_v59 = vadd.f32 %v808_v13, %v807_v15  ;;  %vm586_vm12 = vcmp.eq.f32.partialorder %v1828_v55, 0.0  ;;  %1255 = vrsqrt.f32 %v1871_v0  ;;  %v782_v44 = vsel %vm781_vm15, %v1844_v50, %v780_v42 }
 0x11b   : > { %v794_v9 = vmul.f32 %v1244_v60, %v1856_v56  ;;  %v803_v12 = vsel %vm320_vm4, %v778_v46, 0.0  ;;  %v581_v28 = vsel %vm579_vm10, %v580_v33, %v578_v54  ;;  %v785_v41 = vsel %vm783_vm1, %v784_v27, %v782_v44  ;;  %v1246_v10 = vpop.eup %1245 }
 0x11c   : > { %v789_v57 = vsel %vm788_vm2, %v1853_v48, %v787_v45  ;;  %v804_v19 = vadd.f32 %v803_v12, %v802_v47  ;;  %v587_v32 = vand.u32 2147483648, %v1828_v55  ;;  %v810_v34 = vsel %vm320_vm4, %v785_v41, 0.0 }
 0x11d   : > { %v792_v61 = vsel %vm790_vm3, %v791_v24, %v789_v57  ;;  %v796_v58 = vsel %vm795_vm5, %v1856_v56, %v794_v9  ;;  %vm591_vm13 = vcmp.eq.f32.partialorder %v1839_v26, inf  ;;  %v811_v53 = vadd.f32 %v810_v34, %v809_v59  ;;  %v1248_v21 = vpop.eup %1247 }
 0x11e   : > { %v799_v50 = vsel %vm797_vm6, %v798_v8, %v796_v58  ;;  %v805_v39 = vsel %vm320_vm4, %v792_v61, 0.0  ;;  %v569_v17 = vmul.f32 %v1246_v10, %v1715_v52  ;;  %vm593_vm14 = vcmp.eq.f32.partialorder %v1839_v26, 0.0 }
 0x11f   : > { %v806_v27 = vadd.f32 %v805_v39, %v804_v19  ;;  %v812_v48 = vsel %vm320_vm4, %v799_v50, 0.0  ;;  %v594_v24 = vand.u32 2147483648, %v1839_v26  ;;  %v583_v56 = vmul.f32 %v1248_v21, %v1828_v55 }
 0x120   : > { %v813_v35 = vadd.f32 %v812_v48, %v811_v53  ;;  %v571_v40 = vsel %vm570_vm9, %v1715_v52, %v569_v17  ;;  %vm598_vm15 = vcmp.eq.f32.partialorder %v1842_v36, inf  ;;  %v1250_v8 = vpop.eup %1249  ;;  %vm600_vm1 = vcmp.eq.f32.partialorder %v1842_v36, 0.0 }
 0x121   : > { %v814_v22 = vsel %vm320_vm4, %v806_v27, 0.0  ;;  %v574_v23 = vsel %vm572_vm0, %v573_v16, %v571_v40  ;;  %1257 = vrsqrt.f32 %v1734_v14  ;;  %v585_v63 = vsel %vm584_vm11, %v1828_v55, %v583_v56 }
 0x122   : > { %v815_v5 = vsel %vm320_vm4, %v813_v35, 0.0  ;;  %v590_v2 = vmul.f32 %v1250_v8, %v1839_v26  ;;  %v618_v25 = vsel %vm320_vm4, %v567_v7, 0.0  ;;  %v1252_v37 = vpop.eup %1251  ;;  %v588_v52 = vsel %vm586_vm12, %v587_v32, %v585_v63 }
 0x123   : > { %v816_v15 = vadd.f32 %v815_v5, %v814_v22  ;;  %v619_v38 = vsel %vm320_vm4, %v581_v28, 0.0  ;;  %v625_v16 = vsel %vm320_vm4, %v574_v23, 0.0  ;;  %v597_v18 = vmul.f32 %v1252_v37, %v1842_v36 }
 0x124   : > { %v592_v1 = vsel %vm591_vm13, %v1839_v26, %v590_v2  ;;  %v626_v33 = vsel %vm320_vm4, %v588_v52, 0.0  ;;  %1259 = vrsqrt.f32 %v1738_v29  ;;  %v601_v3 = vand.u32 2147483648, %v1842_v36 }
 0x125   : > { %v1254_v7 = vpop.eup %1253  ;;  %817 = vadd.xlane.f32.xlu1 %v816_v15  ;;  %v595_v55 = vsel %vm593_vm14, %v594_v24, %v592_v1  ;;  %vm605_vm2 = vcmp.eq.f32.partialorder %v1866_v4, inf  ;;  %vm607_vm3 = vcmp.eq.f32.partialorder %v1866_v4, 0.0  ;;  %v599_v31 = vsel %vm598_vm15, %v1842_v36, %v597_v18 }
 0x126   : > { %v604_v47 = vmul.f32 %v1254_v7, %v1866_v4  ;;  %v608_v54 = vand.u32 2147483648, %v1866_v4  ;;  %v621_v62 = vsel %vm320_vm4, %v595_v55, 0.0  ;;  %v602_v26 = vsel %vm600_vm1, %v601_v3, %v599_v31 }
 0x127   : > { %v1256_v43 = vpop.eup %1255  ;;  %v620_v42 = vadd.f32 %v619_v38, %v618_v25  ;;  %v627_v13 = vadd.f32 %v626_v33, %v625_v16  ;;  %1261 = vrsqrt.f32 %v1834_v20  ;;  %vm612_vm5 = vcmp.eq.f32.partialorder %v1871_v0, inf }
 0x128   : > { %v606_v60 = vsel %vm605_vm2, %v1866_v4, %v604_v47  ;;  %v611_v46 = vmul.f32 %v1256_v43, %v1871_v0  ;;  %v628_v45 = vsel %vm320_vm4, %v602_v26, 0.0  ;;  %v615_v44 = vand.u32 2147483648, %v1871_v0 }
 0x129   : > { %v609_v59 = vsel %vm607_vm3, %v608_v54, %v606_v60  ;;  %v622_v9 = vadd.f32 %v621_v62, %v620_v42  ;;  %1263 = vrsqrt.f32 %v1837_v30  ;;  %v2025_v36 = vadd.f32 1e-06, %v1883_v11 }
 0x12a   : > { %v613_v12 = vsel %vm612_vm5, %v1871_v0, %v611_v46  ;;  %vm614_vm6 = vcmp.eq.f32.partialorder %v1871_v0, 0.0  ;;  %v623_v4 = vsel %vm320_vm4, %v609_v59, 0.0  ;;  %v629_v57 = vadd.f32 %v628_v45, %v627_v13 }
 0x12b   : > { %v616_v28 = vsel %vm614_vm6, %v615_v44, %v613_v12  ;;  %v624_v41 = vadd.f32 %v623_v4, %v622_v9  ;;  %1265 = vrsqrt.f32 %v1848_v49  ;;  %v2032_v19 = vadd.f32 1e-06, %v1877_v51 }
 0x12c   : > { %v630_v32 = vsel %vm320_vm4, %v616_v28, 0.0  ;;  %1267 = vrsqrt.f32 %v1850_v6  ;;  %vm945_vm7 = vcmp.eq.f32.partialorder %v1734_v14, inf  ;;  %v948_v53 = vand.u32 2147483648, %v1734_v14 }
 0x12d   : > { %v631_v10 = vadd.f32 %v630_v32, %v629_v57  ;;  %v632_v11 = vsel %vm320_vm4, %v624_v41, 0.0  ;;  %1269 = vrsqrt.f32 %v2025_v36  ;;  %vm952_vm8 = vcmp.eq.f32.partialorder %v1738_v29, inf }
 0x12e   : > { %v1258_v61 = vpop.eup %1257  ;;  %1271 = vrsqrt.f32 %v2032_v19  ;;  %vm947_vm9 = vcmp.eq.f32.partialorder %v1734_v14, 0.0  ;;  %vm954_vm10 = vcmp.eq.f32.partialorder %v1738_v29, 0.0  ;;  %v955_v27 = vand.u32 2147483648, %v1738_v29 }
 0x12f   : > { %v633_v0 = vsel %vm320_vm4, %v631_v10, 0.0  ;;  %v944_v58 = vmul.f32 %v1258_v61, %v1734_v14  ;;  %vm959_vm0 = vcmp.eq.f32.partialorder %v1834_v20, inf  ;;  %vm961_vm11 = vcmp.eq.f32.partialorder %v1834_v20, 0.0 }
 0x130   : > { %v634_v34 = vadd.f32 %v633_v0, %v632_v11  ;;  %v962_v56 = vand.u32 2147483648, %v1834_v20  ;;  %vm966_vm12 = vcmp.eq.f32.partialorder %v1837_v30, inf  ;;  %vm968_vm13 = vcmp.eq.f32.partialorder %v1837_v30, 0.0 }
 0x131   : > { %v1260_v50 = vpop.eup %1259  ;;  %v946_v51 = vsel %vm945_vm7, %v1734_v14, %v944_v58  ;;  %vm973_vm14 = vcmp.eq.f32.partialorder %v1848_v49, inf  ;;  %vm975_vm15 = vcmp.eq.f32.partialorder %v1848_v49, 0.0  ;;  %v976_v5 = vand.u32 2147483648, %v1848_v49 }
 0x132   : > { %635 = vadd.xlane.f32.xlu0 %v634_v34  ;;  %v951_v39 = vmul.f32 %v1260_v50, %v1738_v29  ;;  %v949_v48 = vsel %vm947_vm9, %v948_v53, %v946_v51  ;;  %vm980_vm1 = vcmp.eq.f32.partialorder %v1850_v6, inf  ;;  %vm982_vm2 = vcmp.eq.f32.partialorder %v1850_v6, 0.0 }
 0x133   : > { %v999_v63 = vsel %vm320_vm4, %v949_v48, 0.0  ;;  %v983_v38 = vand.u32 2147483648, %v1850_v6  ;;  %vm987_vm3 = vcmp.eq.f32.partialorder %v2025_v36, inf  ;;  %vm989_vm5 = vcmp.eq.f32.partialorder %v2025_v36, 0.0 }
 0x134   : > { %v1262_v17 = vpop.eup %1261  ;;  %v953_v21 = vsel %vm952_vm8, %v1738_v29, %v951_v39  ;;  %v969_v29 = vand.u32 2147483648, %v1837_v30  ;;  %v990_v54 = vand.u32 2147483648, %v2025_v36  ;;  %vm994_vm6 = vcmp.eq.f32.partialorder %v2032_v19, inf }
 0x135   : > { %v958_v24 = vmul.f32 %v1262_v17, %v1834_v20  ;;  %v956_v40 = vsel %vm954_vm10, %v955_v27, %v953_v21  ;;  %v997_v13 = vand.u32 2147483648, %v2032_v19  ;;  %vm996_vm7 = vcmp.eq.f32.partialorder %v2032_v19, 0.0 }
 0x136   : > { %v1264_v35 = vpop.eup %1263  ;;  %v1006_v37 = vsel %vm320_vm4, %v956_v40, 0.0  ;;  %vm345_vm8 = vcmask 0   ;;  %v1391_v57 = vmov 0.0  }
 0x137   : > { %v960_v14 = vsel %vm959_vm0, %v1834_v20, %v958_v24  ;;  %v965_v8 = vmul.f32 %v1264_v35, %v1837_v30  ;;  %346 = vst.msk [vmem:[%s2101_s19] sm:$0x1] %vm345_vm8, %v1391_v57 }
 0x138   : > { %v1266_v22 = vpop.eup %1265  ;;  %v963_v23 = vsel %vm961_vm11, %v962_v56, %v960_v14 }
 0x139   : > { %v967_v2 = vsel %vm966_vm12, %v1837_v30, %v965_v8  ;;  %v972_v25 = vmul.f32 %v1266_v22, %v1848_v49  ;;  %v1000_v20 = vsel %vm320_vm4, %v963_v23, 0.0  ;;  %v1268_v15 = vpop.eup %1267 }
 0x13a   : > { %v970_v52 = vsel %vm968_vm13, %v969_v29, %v967_v2  ;;  %v1270_v16 = vpop.eup %1269  ;;  %v979_v30 = vmul.f32 %v1268_v15, %v1850_v6  ;;  %v1001_v18 = vadd.f32 %v1000_v20, %v999_v63 }
 0x13b   : > { %v974_v1 = vsel %vm973_vm14, %v1848_v49, %v972_v25  ;;  %v1007_v33 = vsel %vm320_vm4, %v970_v52, 0.0  ;;  %v986_v55 = vmul.f32 %v1270_v16, %v2025_v36  ;;  %v1272_v31 = vpop.eup %1271 }
 0x13c   : > { %v977_v7 = vsel %vm975_vm15, %v976_v5, %v974_v1  ;;  %v1008_v3 = vadd.f32 %v1007_v33, %v1006_v37  ;;  %v981_v47 = vsel %vm980_vm1, %v1850_v6, %v979_v30  ;;  %v993_v26 = vmul.f32 %v1272_v31, %v2032_v19 }
 0x13d   : > { %v1002_v62 = vsel %vm320_vm4, %v977_v7, 0.0  ;;  %v984_v43 = vsel %vm982_vm2, %v983_v38, %v981_v47  ;;  %v988_v49 = vsel %vm987_vm3, %v2025_v36, %v986_v55 }
 0x13e   : > { %v991_v42 = vsel %vm989_vm5, %v990_v54, %v988_v49  ;;  %v1003_v60 = vadd.f32 %v1002_v62, %v1001_v18  ;;  %v1009_v46 = vsel %vm320_vm4, %v984_v43, 0.0  ;;  %v995_v45 = vsel %vm994_vm6, %v2032_v19, %v993_v26  ;;  %v1026_v8 = vld [vmem:[%s2101_s19] sm:$0x1] }
 0x13f   : > { %v1004_v6 = vsel %vm320_vm4, %v991_v42, 0.0  ;;  %v1010_v59 = vadd.f32 %v1009_v46, %v1008_v3  ;;  %v998_v44 = vsel %vm996_vm7, %v997_v13, %v995_v45 }
 0x140   : > { %v1005_v9 = vadd.f32 %v1004_v6, %v1003_v60  ;;  %v1011_v36 = vsel %vm320_vm4, %v998_v44, 0.0 }
 0x141   : > { %v1012_v12 = vadd.f32 %v1011_v36, %v1010_v59 }
 0x142   : > { %v1013_v4 = vsel %vm320_vm4, %v1005_v9, 0.0 }
 0x143   : > { %v1014_v28 = vsel %vm320_vm4, %v1012_v12, 0.0 }
 0x144   : > { %v1015_v41 = vadd.f32 %v1014_v28, %v1013_v4 }
 0x146   : > { %1016 = vadd.xlane.f32.xlu0 %v1015_v41 }
 0x1ae   : > { %v818_v19 = vpop.xlane.xlu1 %817 }
 0x1af   : > { %v819_v32 = vrot.slane %v818_v19, 4 }
 0x1b1   : > { %v820_v10 = vadd.f32 %v819_v32, %v818_v19 }
 0x1b3   : > { %v821_v11 = vrot.slane %v820_v10, 2 }
 0x1b5   : > { %v822_v58 = vadd.f32 %v821_v11, %v820_v10 }
 0x1b7   : > { %v823_v51 = vrot.slane %v822_v58, 1 }
 0x1b9   : > { %v824_v17 = vadd.f32 %v823_v51, %v822_v58 }
 0x1bb   : > { %v636_v61 = vpop.xlane.xlu0 %635 }
 0x1bc   : > { %v637_v0 = vrot.slane %v636_v61, 4 }
 0x1be   : > { %v638_v34 = vadd.f32 %v637_v0, %v636_v61 }
 0x1c0   : > { %v639_v50 = vrot.slane %v638_v34, 2 }
 0x1c2   : > { %v640_v39 = vadd.f32 %v639_v50, %v638_v34 }
 0x1c4   : > { %v641_v53 = vrot.slane %v640_v39, 1 }
 0x1c6   : > { %v642_v21 = vadd.f32 %v641_v53, %v640_v39 }
 0x1c8   : > { %1142 = vpush %v642_v21 }
 0x1c9   : > { %1144 = vpush %v824_v17 }
 0x1cf   : > { %v1017_v27 = vpop.xlane.xlu0 %1016 }
 0x1d0   : > { %v1018_v48 = vrot.slane %v1017_v27, 4 }
 0x1d2   : > { %v1019_v24 = vadd.f32 %v1018_v48, %v1017_v27 }
 0x1d4   : > { %v1020_v35 = vrot.slane %v1019_v24, 2 }
 0x1d6   : > { %v1021_v40 = vadd.f32 %v1020_v35, %v1019_v24 }
 0x1d8   : > { %v1022_v56 = vrot.slane %v1021_v40, 1 }
 0x1da   : > { %v1023_v14 = vadd.f32 %v1022_v56, %v1021_v40 }
 0x1dc   : > { %1146 = vpush %v1023_v14 }
 0x1f9   : > { %s1143_s12 = spop %1142 }
 0x1fa   : > { %s1145_s23 = spop %1144  ;;  %s644_s24 = smul.f32 10.0, %s1143_s12 }
 0x1fb   : > { %s826_s25 = smul.f32 10.0, %s1145_s23 }
 0x1fd   : > { %s827_s26 = sadd.f32 %s826_s25, %s644_s24 }
 0x20d   : > { %s1147_s28 = spop %1146 }
 0x20e   : > { %s1025_s4 = sadd.f32 %s1147_s28, %s827_s26 }
 0x210   : > { %s1027_s27 = smul.f32 0.00390625, %s1025_s4 }
 0x212   : > { %v1028_v29 = vstv %s1027_s27 }
 0x213   : > { %v1029_v22 = vadd.f32 %v1028_v29, %v1026_v8 }
 0x215   : > { %1031 = vst.msk [vmem:[%s2101_s19] sm:$0x1] %vm345_vm8, %v1029_v22 }
 0x216 PF: > { %s18_s14 = sadd.s32 1, %s1383_s14   ;;  %s2133_s9 = smov %s1367_s10 }
 0x217   : > { %p15_p9 = scmp.ge.s32.totalorder %s18_s14, 4   ;;  %s2134_s10 = smov %s1371_s11 }
 0x218   : > { %s2135_s11 = smov %s1456_s21  ;;  %s2136_s12 = smov %s1379_s13 }
 0x219   : > { %s2137_s13 = smov %s2139_s16  ;;  %17 = sbr.rel (!%p15_p9) target bundleno = 6 (0x6), region = 89 }
 0x21e   :  { %1049 = vsyncpa [#allocation4], 1 }
 0x21f   :  { %1051 = vsyncpa [#allocation4 + $0x1], 1 }
 0x220   :  { %1052 = vsyncpa [#allocation6], 1 }
 0x221   :  { %1054 = vsyncpa [#allocation6 + $0x1], 1 }

</bundles_post_ra>
